<compile_context>
chip_gen: v7x
topology: tpu7x:2x2x1
jax: 0.10.0
libtpu: 0.0.40
codegen_flags: <defaults>
</compile_context>

<pallas_src>
import functools

import jax
import jax.numpy as jnp
from jax.experimental import pallas as pl
from jax.experimental.pallas import tpu as pltpu

LANE = 128


def _round_up(x, m):
    return (x + m - 1) // m * m


# ------------------------------ fused kernel --------------------------------

def _cnn_dqn_kernel(x_ref, w1_ref, b1_ref, s2_ref, w2_ref, b2_ref,
                    w3_ref, b3_ref, wf1_ref, bf1_ref, wf2_ref, bf2_ref, o_ref):
    f32 = jnp.float32
    bf16 = jnp.bfloat16

    oh1 = x_ref.shape[1] - 1          # conv1 output height (8 for 36x36 input)
    ow1 = x_ref.shape[2] - 1          # conv1 output width
    m1 = oh1 * ow1                    # conv1 output positions (64)
    m2 = s2_ref.shape[1]              # conv2 output positions (9)
    c1 = w1_ref.shape[-1]             # 32
    c2 = w2_ref.shape[-1]             # 64
    c3 = w3_ref.shape[-1]             # 64

    xv = x_ref[0]                     # (oh1+1, ow1+1, 16*Cin) bf16, space-to-depth

    # ---- conv1: 2x2 taps of the space-to-depth input (contiguous slices) ----
    acc1 = jnp.broadcast_to(b1_ref[...], (m1, c1)).astype(f32)
    for di in range(2):
        for dj in range(2):
            patch = xv[di:di + oh1, dj:dj + ow1, :].reshape(m1, -1)
            acc1 = acc1 + jnp.dot(patch, w1_ref[di * 2 + dj],
                                  preferred_element_type=f32)
    a1 = jnp.maximum(acc1, 0.0).astype(bf16)                     # (m1, 32)

    # ---- conv2: 4x4 taps, stride 2; patch-row gather = one-hot MXU matmul ----
    acc2 = jnp.broadcast_to(b2_ref[...], (m2, c2)).astype(f32)
    for t in range(s2_ref.shape[0]):
        rows = jnp.dot(s2_ref[t], a1, preferred_element_type=f32).astype(bf16)
        acc2 = acc2 + jnp.dot(rows, w2_ref[t], preferred_element_type=f32)
    a2 = jnp.maximum(acc2, 0.0).astype(bf16)                     # (m2, 64)

    # ---- conv3 (1x1 output): full contraction over the m2 spatial rows ----
    acc3 = jnp.broadcast_to(b3_ref[...], (1, c3)).astype(f32)
    for s in range(m2):
        acc3 = acc3 + jnp.dot(a2[s:s + 1, :], w3_ref[s],
                              preferred_element_type=f32)
    a3 = jnp.maximum(acc3, 0.0).astype(bf16)                     # (1, 64)

    # ---- fc1 + fc2 (hidden never leaves VMEM); f32 lane-dense store ----
    h = jnp.dot(a3, wf1_ref[...], preferred_element_type=f32)
    h = jnp.maximum(h + bf1_ref[...], 0.0).astype(bf16)          # (1, 512)
    q = jnp.dot(h, wf2_ref[...], preferred_element_type=f32) + bf2_ref[...]
    o_ref[0] = q.astype(o_ref.dtype)                             # (1, A_pad)


def _resident_spec(arr):
    zeros = (0,) * arr.ndim
    return pl.BlockSpec(arr.shape, lambda b, _z=zeros: _z)


def _cnn_dqn_pallas(xs, prep):
    """xs: (N, H/4, W/4, 16*Cin) bf16 space-to-depth input -> (N, A_pad) f32."""
    n = xs.shape[0]
    weights = (prep["w1"], prep["b1"], prep["s2"], prep["w2"], prep["b2"],
               prep["w3"], prep["b3"], prep["wfc1"], prep["bfc1"],
               prep["wfc2"], prep["bfc2"])

    oh1, ow1, k1 = xs.shape[1] - 1, xs.shape[2] - 1, xs.shape[3]
    m1 = oh1 * ow1
    ntap2, m2, _ = prep["s2"].shape
    c1 = prep["w1"].shape[-1]
    c2 = prep["w2"].shape[-1]
    c3 = prep["w3"].shape[-1]
    hidden = prep["wfc1"].shape[-1]
    a_pad = prep["wfc2"].shape[-1]

    macs = (4 * m1 * k1 * c1                        # conv1 taps
            + ntap2 * m2 * (m1 * c1 + c1 * c2)      # conv2 gather + conv2
            + m2 * c2 * c3                          # conv3
            + c3 * hidden + hidden * a_pad)         # fc1 + fc2
    wbytes = sum(int(w.size) * w.dtype.itemsize for w in weights)
    in_blk = (int(xs.size) // n) * xs.dtype.itemsize
    out_blk = a_pad * 4
    block_bytes = in_blk + wbytes + out_blk
    vmem_limit = int(min(32 << 20, max(8 << 20, 4 * block_bytes)))

    cost = pl.CostEstimate(
        flops=2 * n * macs, transcendentals=0,
        bytes_accessed=int(xs.size) * xs.dtype.itemsize + wbytes + n * out_blk)

    out = pl.pallas_call(
        _cnn_dqn_kernel,
        out_shape=jax.ShapeDtypeStruct((n, 1, a_pad), jnp.float32),
        grid=(n,),
        in_specs=[pl.BlockSpec((1,) + xs.shape[1:], lambda b: (b, 0, 0, 0))]
                 + [_resident_spec(w) for w in weights],
        out_specs=pl.BlockSpec((1, 1, a_pad), lambda b: (b, 0, 0)),
        compiler_params=pltpu.CompilerParams(
            dimension_semantics=("parallel",),
            vmem_limit_bytes=vmem_limit),
        cost_estimate=cost,
    )(xs, *weights)
    return out.reshape(n, a_pad)


# --------------------------- parameter preparation ---------------------------

def init_params(key, in_channels, num_actions, feat_size):
    """Raw parameters in PyTorch layout (OIHW conv weights, (out,in) Linear)."""
    ks = jax.random.split(key, 10)
    s = 0.05
    return {
        "w1": s * jax.random.normal(ks[0], (32, in_channels, 8, 8), jnp.float32),
        "b1": s * jax.random.normal(ks[1], (32,), jnp.float32),
        "w2": s * jax.random.normal(ks[2], (64, 32, 4, 4), jnp.float32),
        "b2": s * jax.random.normal(ks[3], (64,), jnp.float32),
        "w3": s * jax.random.normal(ks[4], (64, 64, 3, 3), jnp.float32),
        "b3": s * jax.random.normal(ks[5], (64,), jnp.float32),
        "wfc1": s * jax.random.normal(ks[6], (512, feat_size), jnp.float32),
        "bfc1": s * jax.random.normal(ks[7], (512,), jnp.float32),
        "wfc2": s * jax.random.normal(ks[8], (num_actions, 512), jnp.float32),
        "bfc2": s * jax.random.normal(ks[9], (num_actions,), jnp.float32),
    }


def prepare_params(raw, in_channels, input_hw, num_actions):
    """One-time weight prep: space-to-depth conv1 taps, per-tap conv2/conv3
    matrices + one-hot row-selection matrices, bf16 weights, f32 biases.
    Only the final fc2 output is padded to a 128-lane width."""
    H, W = input_hw
    assert H % 4 == 0 and W % 4 == 0, "input spatial must be divisible by 4"
    oh1, ow1 = (H - 8) // 4 + 1, (W - 8) // 4 + 1
    oh2, ow2 = (oh1 - 4) // 2 + 1, (ow1 - 4) // 2 + 1
    oh3, ow3 = oh2 - 2, ow2 - 2
    assert oh3 == 1 and ow3 == 1, "fused kernel assumes a 1x1 conv3 output"

    C = in_channels
    c1, c2, c3 = raw["w1"].shape[0], raw["w2"].shape[0], raw["w3"].shape[0]
    hidden = raw["wfc1"].shape[0]
    assert raw["wfc1"].shape[1] == c3 * oh3 * ow3
    a_pad = _round_up(num_actions, LANE)

    # conv1 -> 2x2 space-to-depth taps: (4, 16*C, 32), channel order (a, b, c).
    w1 = raw["w1"].reshape(c1, C, 2, 4, 2, 4)            # (o, c, di, a, dj, b)
    w1 = jnp.transpose(w1, (2, 4, 3, 5, 1, 0))           # (di, dj, a, b, c, o)
    w1 = w1.reshape(4, 16 * C, c1).astype(jnp.bfloat16)

    # conv2 -> 4x4 per-tap (32, 64) weights + (9, 64) one-hot row selectors.
    w2 = jnp.transpose(raw["w2"], (2, 3, 1, 0)).reshape(16, c1, c2)
    w2 = w2.astype(jnp.bfloat16)
    ohp = jnp.arange(oh2)[:, None]
    owp = jnp.arange(ow2)[None, :]
    sel = []
    for i in range(4):
        for j in range(4):
            r = ((2 * ohp + i) * ow1 + (2 * owp + j)).reshape(-1)
            sel.append(jax.nn.one_hot(r, oh1 * ow1, dtype=jnp.bfloat16))
    s2 = jnp.stack(sel)                                   # (16, oh2*ow2, oh1*ow1)

    # conv3 (1x1 output) -> per-position (64, 64) weights.
    w3 = jnp.transpose(raw["w3"], (2, 3, 1, 0)).reshape(9, c2, c3)
    w3 = w3.astype(jnp.bfloat16)

    wfc1 = raw["wfc1"].T.astype(jnp.bfloat16)             # (64, 512)
    wfc2 = jnp.pad(raw["wfc2"].T,
                   ((0, 0), (0, a_pad - num_actions))).astype(jnp.bfloat16)
    bfc2 = jnp.pad(raw["bfc2"], (0, a_pad - num_actions)).astype(jnp.float32)

    return {
        "w1": w1, "b1": raw["b1"].astype(jnp.float32).reshape(1, c1),
        "s2": s2, "w2": w2, "b2": raw["b2"].astype(jnp.float32).reshape(1, c2),
        "w3": w3, "b3": raw["b3"].astype(jnp.float32).reshape(1, c3),
        "wfc1": wfc1, "bfc1": raw["bfc1"].astype(jnp.float32).reshape(1, hidden),
        "wfc2": wfc2, "bfc2": bfc2.reshape(1, a_pad),
    }


# ------------------------------ forward wrapper -------------------------------

def cnn_dqn_forward(prep, x_nchw, num_actions):
    """x: (N, C, H, W) float32 -> (N, num_actions) float32."""
    n, c, h, w = x_nchw.shape
    # NCHW -> NHWC -> space-to-depth(4): (N, H/4, W/4, 16*C).  A single cheap
    # transpose with no data duplication (unlike im2col); conv1 patch windows
    # then become contiguous in-kernel slices.
    x = jnp.transpose(x_nchw, (0, 2, 3, 1)).astype(jnp.bfloat16)
    x = x.reshape(n, h // 4, 4, w // 4, 4, c)
    x = jnp.transpose(x, (0, 1, 3, 2, 4, 5)).reshape(n, h // 4, w // 4, 16 * c)
    q = _cnn_dqn_pallas(x, prep)
    return q[:, :num_actions]                 # strip lane padding at the end


# ----------------------------- pure-JAX reference ----------------------------

def _reference_forward(params, x):
    def conv(x, w, b, stride):
        y = jax.lax.conv_general_dilated(
            x, w, window_strides=(stride, stride), padding="VALID",
            dimension_numbers=("NCHW", "OIHW", "NCHW"))
        return jax.nn.relu(y + b[None, :, None, None])

    h = conv(x, params["w1"], params["b1"], 4)
    h = conv(h, params["w2"], params["b2"], 2)
    h = conv(h, params["w3"], params["b3"], 1)
    h = h.reshape(h.shape[0], -1)
    h = jax.nn.relu(h @ params["wfc1"].T + params["bfc1"])
    return h @ params["wfc2"].T + params["bfc2"]


# --------------------------------- main ---------------------------------------

if __name__ == "__main__":
    # Conv-consistent shapes: 36x36 -> 8x8 -> 3x3 -> 1x1 spatial, feat = 64.
    batch, in_channels, H, W = 2, 4, 36, 36
    num_actions = 6
    feat_size = 64

    key = jax.random.PRNGKey(0)
    pkey, xkey = jax.random.split(key)
    raw = init_params(pkey, in_channels, num_actions, feat_size)
    prep = prepare_params(raw, in_channels, (H, W), num_actions)
    x = jax.random.normal(xkey, (batch, in_channels, H, W), jnp.float32)

    fwd = jax.jit(functools.partial(cnn_dqn_forward, num_actions=num_actions))
    q = jax.block_until_ready(fwd(prep, x))
    q_ref = jax.block_until_ready(_reference_forward(raw, x))

    assert q.shape == (batch, num_actions)
    # bf16 weights/activations with f32 accumulation vs. pure-f32 reference.
    assert jnp.allclose(q, q_ref, atol=3e-2, rtol=3e-2), float(
        jnp.max(jnp.abs(q - q_ref)))
    print("KERNEL_OK")
</pallas_src>

<mosaic_0001>
module attributes {stable_mosaic.version = 11 : i64} {
  func.func @_cnn_dqn_kernel(%arg0: i32, %arg1: memref<1x9x9x64xbf16, #tpu.memory_space<vmem>>, %arg2: memref<4x64x32xbf16, #tpu.memory_space<vmem>>, %arg3: memref<1x32xf32, #tpu.memory_space<vmem>>, %arg4: memref<16x9x64xbf16, #tpu.memory_space<vmem>>, %arg5: memref<16x32x64xbf16, #tpu.memory_space<vmem>>, %arg6: memref<1x64xf32, #tpu.memory_space<vmem>>, %arg7: memref<9x64x64xbf16, #tpu.memory_space<vmem>>, %arg8: memref<1x64xf32, #tpu.memory_space<vmem>>, %arg9: memref<64x512xbf16, #tpu.memory_space<vmem>>, %arg10: memref<1x512xf32, #tpu.memory_space<vmem>>, %arg11: memref<512x128xbf16, #tpu.memory_space<vmem>>, %arg12: memref<1x128xf32, #tpu.memory_space<vmem>>, %arg13: memref<1x1x128xf32, #tpu.memory_space<vmem>>) attributes {dimension_semantics = [#tpu.dimension_semantics<parallel>], iteration_bounds = array<i64: 2>, scalar_prefetch = 0 : i64, scratch_operands = 0 : i64, tpu.core_type = #tpu.core_type<tc>, window_params = [{transform_indices = @transform_0, window_bounds = array<i64: 1, 9, 9, 64>}, {pipeline_mode = #tpu.pipeline_mode<synchronous>, transform_indices = @transform_1, window_bounds = array<i64: 4, 64, 32>}, {pipeline_mode = #tpu.pipeline_mode<synchronous>, transform_indices = @transform_2, window_bounds = array<i64: 1, 32>}, {pipeline_mode = #tpu.pipeline_mode<synchronous>, transform_indices = @transform_3, window_bounds = array<i64: 16, 9, 64>}, {pipeline_mode = #tpu.pipeline_mode<synchronous>, transform_indices = @transform_4, window_bounds = array<i64: 16, 32, 64>}, {pipeline_mode = #tpu.pipeline_mode<synchronous>, transform_indices = @transform_5, window_bounds = array<i64: 1, 64>}, {pipeline_mode = #tpu.pipeline_mode<synchronous>, transform_indices = @transform_6, window_bounds = array<i64: 9, 64, 64>}, {pipeline_mode = #tpu.pipeline_mode<synchronous>, transform_indices = @transform_7, window_bounds = array<i64: 1, 64>}, {pipeline_mode = #tpu.pipeline_mode<synchronous>, transform_indices = @transform_8, window_bounds = array<i64: 64, 512>}, {pipeline_mode = #tpu.pipeline_mode<synchronous>, transform_indices = @transform_9, window_bounds = array<i64: 1, 512>}, {pipeline_mode = #tpu.pipeline_mode<synchronous>, transform_indices = @transform_10, window_bounds = array<i64: 512, 128>}, {pipeline_mode = #tpu.pipeline_mode<synchronous>, transform_indices = @transform_11, window_bounds = array<i64: 1, 128>}, {transform_indices = @transform_12, window_bounds = array<i64: 1, 1, 128>}]} {
    %c0 = arith.constant 0 : index
    %c0_0 = arith.constant 0 : index
    %c0_1 = arith.constant 0 : index
    %c0_2 = arith.constant 0 : index
    %0 = vector.load %arg1[%c0, %c0_0, %c0_1, %c0_2] : memref<1x9x9x64xbf16, #tpu.memory_space<vmem>>, vector<1x9x9x64xbf16>
    %1 = vector.shape_cast %0 : vector<1x9x9x64xbf16> to vector<9x9x64xbf16>
    %c0_3 = arith.constant 0 : index
    %c0_4 = arith.constant 0 : index
    %2 = vector.load %arg3[%c0_3, %c0_4] : memref<1x32xf32, #tpu.memory_space<vmem>>, vector<1x32xf32>
    %3 = vector.shape_cast %2 : vector<1x32xf32> to vector<1x32xf32>
    %4 = vector.broadcast %3 : vector<1x32xf32> to vector<64x32xf32>
    %5 = vector.extract_strided_slice %1 {offsets = [0, 0, 0], sizes = [8, 8, 64], strides = [1, 1, 1]} : vector<9x9x64xbf16> to vector<8x8x64xbf16>
    %6 = vector.shape_cast %5 : vector<8x8x64xbf16> to vector<64x64xbf16>
    %c0_5 = arith.constant 0 : index
    %c0_6 = arith.constant 0 : index
    %c0_7 = arith.constant 0 : index
    %7 = vector.load %arg2[%c0_5, %c0_6, %c0_7] : memref<4x64x32xbf16, #tpu.memory_space<vmem>>, vector<1x64x32xbf16>
    %8 = vector.shape_cast %7 : vector<1x64x32xbf16> to vector<64x32xbf16>
    %cst = arith.constant dense<0.000000e+00> : vector<64x32xf32>
    %9 = tpu.matmul %6, %8, %cst {dimension_numbers = #tpu.dot_dimension_numbers<[1], [0], [0], [1], [0, 0, 1, 1], [], []>} : vector<64x64xbf16>, vector<64x32xbf16>, vector<64x32xf32> -> vector<64x32xf32>
    %10 = arith.addf %4, %9 : vector<64x32xf32>
    %11 = vector.extract_strided_slice %1 {offsets = [0, 1, 0], sizes = [8, 8, 64], strides = [1, 1, 1]} : vector<9x9x64xbf16> to vector<8x8x64xbf16>
    %12 = vector.shape_cast %11 : vector<8x8x64xbf16> to vector<64x64xbf16>
    %c1 = arith.constant 1 : index
    %c0_8 = arith.constant 0 : index
    %c0_9 = arith.constant 0 : index
    %13 = vector.load %arg2[%c1, %c0_8, %c0_9] : memref<4x64x32xbf16, #tpu.memory_space<vmem>>, vector<1x64x32xbf16>
    %14 = vector.shape_cast %13 : vector<1x64x32xbf16> to vector<64x32xbf16>
    %cst_10 = arith.constant dense<0.000000e+00> : vector<64x32xf32>
    %15 = tpu.matmul %12, %14, %cst_10 {dimension_numbers = #tpu.dot_dimension_numbers<[1], [0], [0], [1], [0, 0, 1, 1], [], []>} : vector<64x64xbf16>, vector<64x32xbf16>, vector<64x32xf32> -> vector<64x32xf32>
    %16 = arith.addf %10, %15 : vector<64x32xf32>
    %17 = vector.extract_strided_slice %1 {offsets = [1, 0, 0], sizes = [8, 8, 64], strides = [1, 1, 1]} : vector<9x9x64xbf16> to vector<8x8x64xbf16>
    %18 = vector.shape_cast %17 : vector<8x8x64xbf16> to vector<64x64xbf16>
    %c2 = arith.constant 2 : index
    %c0_11 = arith.constant 0 : index
    %c0_12 = arith.constant 0 : index
    %19 = vector.load %arg2[%c2, %c0_11, %c0_12] : memref<4x64x32xbf16, #tpu.memory_space<vmem>>, vector<1x64x32xbf16>
    %20 = vector.shape_cast %19 : vector<1x64x32xbf16> to vector<64x32xbf16>
    %cst_13 = arith.constant dense<0.000000e+00> : vector<64x32xf32>
    %21 = tpu.matmul %18, %20, %cst_13 {dimension_numbers = #tpu.dot_dimension_numbers<[1], [0], [0], [1], [0, 0, 1, 1], [], []>} : vector<64x64xbf16>, vector<64x32xbf16>, vector<64x32xf32> -> vector<64x32xf32>
    %22 = arith.addf %16, %21 : vector<64x32xf32>
    %23 = vector.extract_strided_slice %1 {offsets = [1, 1, 0], sizes = [8, 8, 64], strides = [1, 1, 1]} : vector<9x9x64xbf16> to vector<8x8x64xbf16>
    %24 = vector.shape_cast %23 : vector<8x8x64xbf16> to vector<64x64xbf16>
    %c3 = arith.constant 3 : index
    %c0_14 = arith.constant 0 : index
    %c0_15 = arith.constant 0 : index
    %25 = vector.load %arg2[%c3, %c0_14, %c0_15] : memref<4x64x32xbf16, #tpu.memory_space<vmem>>, vector<1x64x32xbf16>
    %26 = vector.shape_cast %25 : vector<1x64x32xbf16> to vector<64x32xbf16>
    %cst_16 = arith.constant dense<0.000000e+00> : vector<64x32xf32>
    %27 = tpu.matmul %24, %26, %cst_16 {dimension_numbers = #tpu.dot_dimension_numbers<[1], [0], [0], [1], [0, 0, 1, 1], [], []>} : vector<64x64xbf16>, vector<64x32xbf16>, vector<64x32xf32> -> vector<64x32xf32>
    %28 = arith.addf %22, %27 : vector<64x32xf32>
    %cst_17 = arith.constant 0.000000e+00 : f32
    %29 = vector.broadcast %cst_17 : f32 to vector<64x32xf32>
    %30 = arith.maximumf %28, %29 : vector<64x32xf32>
    %31 = arith.truncf %30 : vector<64x32xf32> to vector<64x32xbf16>
    %c0_18 = arith.constant 0 : index
    %c0_19 = arith.constant 0 : index
    %32 = vector.load %arg6[%c0_18, %c0_19] : memref<1x64xf32, #tpu.memory_space<vmem>>, vector<1x64xf32>
    %33 = vector.shape_cast %32 : vector<1x64xf32> to vector<1x64xf32>
    %34 = vector.broadcast %33 : vector<1x64xf32> to vector<9x64xf32>
    %c0_20 = arith.constant 0 : index
    %c0_21 = arith.constant 0 : index
    %c0_22 = arith.constant 0 : index
    %35 = vector.load %arg4[%c0_20, %c0_21, %c0_22] : memref<16x9x64xbf16, #tpu.memory_space<vmem>>, vector<1x9x64xbf16>
    %36 = vector.shape_cast %35 : vector<1x9x64xbf16> to vector<9x64xbf16>
    %cst_23 = arith.constant dense<0.000000e+00> : vector<9x32xf32>
    %37 = tpu.matmul %36, %31, %cst_23 {dimension_numbers = #tpu.dot_dimension_numbers<[1], [0], [0], [1], [0, 0, 1, 1], [], []>} : vector<9x64xbf16>, vector<64x32xbf16>, vector<9x32xf32> -> vector<9x32xf32>
    %38 = arith.truncf %37 : vector<9x32xf32> to vector<9x32xbf16>
    %c0_24 = arith.constant 0 : index
    %c0_25 = arith.constant 0 : index
    %c0_26 = arith.constant 0 : index
    %39 = vector.load %arg5[%c0_24, %c0_25, %c0_26] : memref<16x32x64xbf16, #tpu.memory_space<vmem>>, vector<1x32x64xbf16>
    %40 = vector.shape_cast %39 : vector<1x32x64xbf16> to vector<32x64xbf16>
    %cst_27 = arith.constant dense<0.000000e+00> : vector<9x64xf32>
    %41 = tpu.matmul %38, %40, %cst_27 {dimension_numbers = #tpu.dot_dimension_numbers<[1], [0], [0], [1], [0, 0, 1, 1], [], []>} : vector<9x32xbf16>, vector<32x64xbf16>, vector<9x64xf32> -> vector<9x64xf32>
    %42 = arith.addf %34, %41 : vector<9x64xf32>
    %c1_28 = arith.constant 1 : index
    %c0_29 = arith.constant 0 : index
    %c0_30 = arith.constant 0 : index
    %43 = vector.load %arg4[%c1_28, %c0_29, %c0_30] : memref<16x9x64xbf16, #tpu.memory_space<vmem>>, vector<1x9x64xbf16>
    %44 = vector.shape_cast %43 : vector<1x9x64xbf16> to vector<9x64xbf16>
    %cst_31 = arith.constant dense<0.000000e+00> : vector<9x32xf32>
    %45 = tpu.matmul %44, %31, %cst_31 {dimension_numbers = #tpu.dot_dimension_numbers<[1], [0], [0], [1], [0, 0, 1, 1], [], []>} : vector<9x64xbf16>, vector<64x32xbf16>, vector<9x32xf32> -> vector<9x32xf32>
    %46 = arith.truncf %45 : vector<9x32xf32> to vector<9x32xbf16>
    %c1_32 = arith.constant 1 : index
    %c0_33 = arith.constant 0 : index
    %c0_34 = arith.constant 0 : index
    %47 = vector.load %arg5[%c1_32, %c0_33, %c0_34] : memref<16x32x64xbf16, #tpu.memory_space<vmem>>, vector<1x32x64xbf16>
    %48 = vector.shape_cast %47 : vector<1x32x64xbf16> to vector<32x64xbf16>
    %cst_35 = arith.constant dense<0.000000e+00> : vector<9x64xf32>
    %49 = tpu.matmul %46, %48, %cst_35 {dimension_numbers = #tpu.dot_dimension_numbers<[1], [0], [0], [1], [0, 0, 1, 1], [], []>} : vector<9x32xbf16>, vector<32x64xbf16>, vector<9x64xf32> -> vector<9x64xf32>
    %50 = arith.addf %42, %49 : vector<9x64xf32>
    %c2_36 = arith.constant 2 : index
    %c0_37 = arith.constant 0 : index
    %c0_38 = arith.constant 0 : index
    %51 = vector.load %arg4[%c2_36, %c0_37, %c0_38] : memref<16x9x64xbf16, #tpu.memory_space<vmem>>, vector<1x9x64xbf16>
    %52 = vector.shape_cast %51 : vector<1x9x64xbf16> to vector<9x64xbf16>
    %cst_39 = arith.constant dense<0.000000e+00> : vector<9x32xf32>
    %53 = tpu.matmul %52, %31, %cst_39 {dimension_numbers = #tpu.dot_dimension_numbers<[1], [0], [0], [1], [0, 0, 1, 1], [], []>} : vector<9x64xbf16>, vector<64x32xbf16>, vector<9x32xf32> -> vector<9x32xf32>
    %54 = arith.truncf %53 : vector<9x32xf32> to vector<9x32xbf16>
    %c2_40 = arith.constant 2 : index
    %c0_41 = arith.constant 0 : index
    %c0_42 = arith.constant 0 : index
    %55 = vector.load %arg5[%c2_40, %c0_41, %c0_42] : memref<16x32x64xbf16, #tpu.memory_space<vmem>>, vector<1x32x64xbf16>
    %56 = vector.shape_cast %55 : vector<1x32x64xbf16> to vector<32x64xbf16>
    %cst_43 = arith.constant dense<0.000000e+00> : vector<9x64xf32>
    %57 = tpu.matmul %54, %56, %cst_43 {dimension_numbers = #tpu.dot_dimension_numbers<[1], [0], [0], [1], [0, 0, 1, 1], [], []>} : vector<9x32xbf16>, vector<32x64xbf16>, vector<9x64xf32> -> vector<9x64xf32>
    %58 = arith.addf %50, %57 : vector<9x64xf32>
    %c3_44 = arith.constant 3 : index
    %c0_45 = arith.constant 0 : index
    %c0_46 = arith.constant 0 : index
    %59 = vector.load %arg4[%c3_44, %c0_45, %c0_46] : memref<16x9x64xbf16, #tpu.memory_space<vmem>>, vector<1x9x64xbf16>
    %60 = vector.shape_cast %59 : vector<1x9x64xbf16> to vector<9x64xbf16>
    %cst_47 = arith.constant dense<0.000000e+00> : vector<9x32xf32>
    %61 = tpu.matmul %60, %31, %cst_47 {dimension_numbers = #tpu.dot_dimension_numbers<[1], [0], [0], [1], [0, 0, 1, 1], [], []>} : vector<9x64xbf16>, vector<64x32xbf16>, vector<9x32xf32> -> vector<9x32xf32>
    %62 = arith.truncf %61 : vector<9x32xf32> to vector<9x32xbf16>
    %c3_48 = arith.constant 3 : index
    %c0_49 = arith.constant 0 : index
    %c0_50 = arith.constant 0 : index
    %63 = vector.load %arg5[%c3_48, %c0_49, %c0_50] : memref<16x32x64xbf16, #tpu.memory_space<vmem>>, vector<1x32x64xbf16>
    %64 = vector.shape_cast %63 : vector<1x32x64xbf16> to vector<32x64xbf16>
    %cst_51 = arith.constant dense<0.000000e+00> : vector<9x64xf32>
    %65 = tpu.matmul %62, %64, %cst_51 {dimension_numbers = #tpu.dot_dimension_numbers<[1], [0], [0], [1], [0, 0, 1, 1], [], []>} : vector<9x32xbf16>, vector<32x64xbf16>, vector<9x64xf32> -> vector<9x64xf32>
    %66 = arith.addf %58, %65 : vector<9x64xf32>
    %c4 = arith.constant 4 : index
    %c0_52 = arith.constant 0 : index
    %c0_53 = arith.constant 0 : index
    %67 = vector.load %arg4[%c4, %c0_52, %c0_53] : memref<16x9x64xbf16, #tpu.memory_space<vmem>>, vector<1x9x64xbf16>
    %68 = vector.shape_cast %67 : vector<1x9x64xbf16> to vector<9x64xbf16>
    %cst_54 = arith.constant dense<0.000000e+00> : vector<9x32xf32>
    %69 = tpu.matmul %68, %31, %cst_54 {dimension_numbers = #tpu.dot_dimension_numbers<[1], [0], [0], [1], [0, 0, 1, 1], [], []>} : vector<9x64xbf16>, vector<64x32xbf16>, vector<9x32xf32> -> vector<9x32xf32>
    %70 = arith.truncf %69 : vector<9x32xf32> to vector<9x32xbf16>
    %c4_55 = arith.constant 4 : index
    %c0_56 = arith.constant 0 : index
    %c0_57 = arith.constant 0 : index
    %71 = vector.load %arg5[%c4_55, %c0_56, %c0_57] : memref<16x32x64xbf16, #tpu.memory_space<vmem>>, vector<1x32x64xbf16>
    %72 = vector.shape_cast %71 : vector<1x32x64xbf16> to vector<32x64xbf16>
    %cst_58 = arith.constant dense<0.000000e+00> : vector<9x64xf32>
    %73 = tpu.matmul %70, %72, %cst_58 {dimension_numbers = #tpu.dot_dimension_numbers<[1], [0], [0], [1], [0, 0, 1, 1], [], []>} : vector<9x32xbf16>, vector<32x64xbf16>, vector<9x64xf32> -> vector<9x64xf32>
    %74 = arith.addf %66, %73 : vector<9x64xf32>
    %c5 = arith.constant 5 : index
    %c0_59 = arith.constant 0 : index
    %c0_60 = arith.constant 0 : index
    %75 = vector.load %arg4[%c5, %c0_59, %c0_60] : memref<16x9x64xbf16, #tpu.memory_space<vmem>>, vector<1x9x64xbf16>
    %76 = vector.shape_cast %75 : vector<1x9x64xbf16> to vector<9x64xbf16>
    %cst_61 = arith.constant dense<0.000000e+00> : vector<9x32xf32>
    %77 = tpu.matmul %76, %31, %cst_61 {dimension_numbers = #tpu.dot_dimension_numbers<[1], [0], [0], [1], [0, 0, 1, 1], [], []>} : vector<9x64xbf16>, vector<64x32xbf16>, vector<9x32xf32> -> vector<9x32xf32>
    %78 = arith.truncf %77 : vector<9x32xf32> to vector<9x32xbf16>
    %c5_62 = arith.constant 5 : index
    %c0_63 = arith.constant 0 : index
    %c0_64 = arith.constant 0 : index
    %79 = vector.load %arg5[%c5_62, %c0_63, %c0_64] : memref<16x32x64xbf16, #tpu.memory_space<vmem>>, vector<1x32x64xbf16>
    %80 = vector.shape_cast %79 : vector<1x32x64xbf16> to vector<32x64xbf16>
    %cst_65 = arith.constant dense<0.000000e+00> : vector<9x64xf32>
    %81 = tpu.matmul %78, %80, %cst_65 {dimension_numbers = #tpu.dot_dimension_numbers<[1], [0], [0], [1], [0, 0, 1, 1], [], []>} : vector<9x32xbf16>, vector<32x64xbf16>, vector<9x64xf32> -> vector<9x64xf32>
    %82 = arith.addf %74, %81 : vector<9x64xf32>
    %c6 = arith.constant 6 : index
    %c0_66 = arith.constant 0 : index
    %c0_67 = arith.constant 0 : index
    %83 = vector.load %arg4[%c6, %c0_66, %c0_67] : memref<16x9x64xbf16, #tpu.memory_space<vmem>>, vector<1x9x64xbf16>
    %84 = vector.shape_cast %83 : vector<1x9x64xbf16> to vector<9x64xbf16>
    %cst_68 = arith.constant dense<0.000000e+00> : vector<9x32xf32>
    %85 = tpu.matmul %84, %31, %cst_68 {dimension_numbers = #tpu.dot_dimension_numbers<[1], [0], [0], [1], [0, 0, 1, 1], [], []>} : vector<9x64xbf16>, vector<64x32xbf16>, vector<9x32xf32> -> vector<9x32xf32>
    %86 = arith.truncf %85 : vector<9x32xf32> to vector<9x32xbf16>
    %c6_69 = arith.constant 6 : index
    %c0_70 = arith.constant 0 : index
    %c0_71 = arith.constant 0 : index
    %87 = vector.load %arg5[%c6_69, %c0_70, %c0_71] : memref<16x32x64xbf16, #tpu.memory_space<vmem>>, vector<1x32x64xbf16>
    %88 = vector.shape_cast %87 : vector<1x32x64xbf16> to vector<32x64xbf16>
    %cst_72 = arith.constant dense<0.000000e+00> : vector<9x64xf32>
    %89 = tpu.matmul %86, %88, %cst_72 {dimension_numbers = #tpu.dot_dimension_numbers<[1], [0], [0], [1], [0, 0, 1, 1], [], []>} : vector<9x32xbf16>, vector<32x64xbf16>, vector<9x64xf32> -> vector<9x64xf32>
    %90 = arith.addf %82, %89 : vector<9x64xf32>
    %c7 = arith.constant 7 : index
    %c0_73 = arith.constant 0 : index
    %c0_74 = arith.constant 0 : index
    %91 = vector.load %arg4[%c7, %c0_73, %c0_74] : memref<16x9x64xbf16, #tpu.memory_space<vmem>>, vector<1x9x64xbf16>
    %92 = vector.shape_cast %91 : vector<1x9x64xbf16> to vector<9x64xbf16>
    %cst_75 = arith.constant dense<0.000000e+00> : vector<9x32xf32>
    %93 = tpu.matmul %92, %31, %cst_75 {dimension_numbers = #tpu.dot_dimension_numbers<[1], [0], [0], [1], [0, 0, 1, 1], [], []>} : vector<9x64xbf16>, vector<64x32xbf16>, vector<9x32xf32> -> vector<9x32xf32>
    %94 = arith.truncf %93 : vector<9x32xf32> to vector<9x32xbf16>
    %c7_76 = arith.constant 7 : index
    %c0_77 = arith.constant 0 : index
    %c0_78 = arith.constant 0 : index
    %95 = vector.load %arg5[%c7_76, %c0_77, %c0_78] : memref<16x32x64xbf16, #tpu.memory_space<vmem>>, vector<1x32x64xbf16>
    %96 = vector.shape_cast %95 : vector<1x32x64xbf16> to vector<32x64xbf16>
    %cst_79 = arith.constant dense<0.000000e+00> : vector<9x64xf32>
    %97 = tpu.matmul %94, %96, %cst_79 {dimension_numbers = #tpu.dot_dimension_numbers<[1], [0], [0], [1], [0, 0, 1, 1], [], []>} : vector<9x32xbf16>, vector<32x64xbf16>, vector<9x64xf32> -> vector<9x64xf32>
    %98 = arith.addf %90, %97 : vector<9x64xf32>
    %c8 = arith.constant 8 : index
    %c0_80 = arith.constant 0 : index
    %c0_81 = arith.constant 0 : index
    %99 = vector.load %arg4[%c8, %c0_80, %c0_81] : memref<16x9x64xbf16, #tpu.memory_space<vmem>>, vector<1x9x64xbf16>
    %100 = vector.shape_cast %99 : vector<1x9x64xbf16> to vector<9x64xbf16>
    %cst_82 = arith.constant dense<0.000000e+00> : vector<9x32xf32>
    %101 = tpu.matmul %100, %31, %cst_82 {dimension_numbers = #tpu.dot_dimension_numbers<[1], [0], [0], [1], [0, 0, 1, 1], [], []>} : vector<9x64xbf16>, vector<64x32xbf16>, vector<9x32xf32> -> vector<9x32xf32>
    %102 = arith.truncf %101 : vector<9x32xf32> to vector<9x32xbf16>
    %c8_83 = arith.constant 8 : index
    %c0_84 = arith.constant 0 : index
    %c0_85 = arith.constant 0 : index
    %103 = vector.load %arg5[%c8_83, %c0_84, %c0_85] : memref<16x32x64xbf16, #tpu.memory_space<vmem>>, vector<1x32x64xbf16>
    %104 = vector.shape_cast %103 : vector<1x32x64xbf16> to vector<32x64xbf16>
    %cst_86 = arith.constant dense<0.000000e+00> : vector<9x64xf32>
    %105 = tpu.matmul %102, %104, %cst_86 {dimension_numbers = #tpu.dot_dimension_numbers<[1], [0], [0], [1], [0, 0, 1, 1], [], []>} : vector<9x32xbf16>, vector<32x64xbf16>, vector<9x64xf32> -> vector<9x64xf32>
    %106 = arith.addf %98, %105 : vector<9x64xf32>
    %c9 = arith.constant 9 : index
    %c0_87 = arith.constant 0 : index
    %c0_88 = arith.constant 0 : index
    %107 = vector.load %arg4[%c9, %c0_87, %c0_88] : memref<16x9x64xbf16, #tpu.memory_space<vmem>>, vector<1x9x64xbf16>
    %108 = vector.shape_cast %107 : vector<1x9x64xbf16> to vector<9x64xbf16>
    %cst_89 = arith.constant dense<0.000000e+00> : vector<9x32xf32>
    %109 = tpu.matmul %108, %31, %cst_89 {dimension_numbers = #tpu.dot_dimension_numbers<[1], [0], [0], [1], [0, 0, 1, 1], [], []>} : vector<9x64xbf16>, vector<64x32xbf16>, vector<9x32xf32> -> vector<9x32xf32>
    %110 = arith.truncf %109 : vector<9x32xf32> to vector<9x32xbf16>
    %c9_90 = arith.constant 9 : index
    %c0_91 = arith.constant 0 : index
    %c0_92 = arith.constant 0 : index
    %111 = vector.load %arg5[%c9_90, %c0_91, %c0_92] : memref<16x32x64xbf16, #tpu.memory_space<vmem>>, vector<1x32x64xbf16>
    %112 = vector.shape_cast %111 : vector<1x32x64xbf16> to vector<32x64xbf16>
    %cst_93 = arith.constant dense<0.000000e+00> : vector<9x64xf32>
    %113 = tpu.matmul %110, %112, %cst_93 {dimension_numbers = #tpu.dot_dimension_numbers<[1], [0], [0], [1], [0, 0, 1, 1], [], []>} : vector<9x32xbf16>, vector<32x64xbf16>, vector<9x64xf32> -> vector<9x64xf32>
    %114 = arith.addf %106, %113 : vector<9x64xf32>
    %c10 = arith.constant 10 : index
    %c0_94 = arith.constant 0 : index
    %c0_95 = arith.constant 0 : index
    %115 = vector.load %arg4[%c10, %c0_94, %c0_95] : memref<16x9x64xbf16, #tpu.memory_space<vmem>>, vector<1x9x64xbf16>
    %116 = vector.shape_cast %115 : vector<1x9x64xbf16> to vector<9x64xbf16>
    %cst_96 = arith.constant dense<0.000000e+00> : vector<9x32xf32>
    %117 = tpu.matmul %116, %31, %cst_96 {dimension_numbers = #tpu.dot_dimension_numbers<[1], [0], [0], [1], [0, 0, 1, 1], [], []>} : vector<9x64xbf16>, vector<64x32xbf16>, vector<9x32xf32> -> vector<9x32xf32>
    %118 = arith.truncf %117 : vector<9x32xf32> to vector<9x32xbf16>
    %c10_97 = arith.constant 10 : index
    %c0_98 = arith.constant 0 : index
    %c0_99 = arith.constant 0 : index
    %119 = vector.load %arg5[%c10_97, %c0_98, %c0_99] : memref<16x32x64xbf16, #tpu.memory_space<vmem>>, vector<1x32x64xbf16>
    %120 = vector.shape_cast %119 : vector<1x32x64xbf16> to vector<32x64xbf16>
    %cst_100 = arith.constant dense<0.000000e+00> : vector<9x64xf32>
    %121 = tpu.matmul %118, %120, %cst_100 {dimension_numbers = #tpu.dot_dimension_numbers<[1], [0], [0], [1], [0, 0, 1, 1], [], []>} : vector<9x32xbf16>, vector<32x64xbf16>, vector<9x64xf32> -> vector<9x64xf32>
    %122 = arith.addf %114, %121 : vector<9x64xf32>
    %c11 = arith.constant 11 : index
    %c0_101 = arith.constant 0 : index
    %c0_102 = arith.constant 0 : index
    %123 = vector.load %arg4[%c11, %c0_101, %c0_102] : memref<16x9x64xbf16, #tpu.memory_space<vmem>>, vector<1x9x64xbf16>
    %124 = vector.shape_cast %123 : vector<1x9x64xbf16> to vector<9x64xbf16>
    %cst_103 = arith.constant dense<0.000000e+00> : vector<9x32xf32>
    %125 = tpu.matmul %124, %31, %cst_103 {dimension_numbers = #tpu.dot_dimension_numbers<[1], [0], [0], [1], [0, 0, 1, 1], [], []>} : vector<9x64xbf16>, vector<64x32xbf16>, vector<9x32xf32> -> vector<9x32xf32>
    %126 = arith.truncf %125 : vector<9x32xf32> to vector<9x32xbf16>
    %c11_104 = arith.constant 11 : index
    %c0_105 = arith.constant 0 : index
    %c0_106 = arith.constant 0 : index
    %127 = vector.load %arg5[%c11_104, %c0_105, %c0_106] : memref<16x32x64xbf16, #tpu.memory_space<vmem>>, vector<1x32x64xbf16>
    %128 = vector.shape_cast %127 : vector<1x32x64xbf16> to vector<32x64xbf16>
    %cst_107 = arith.constant dense<0.000000e+00> : vector<9x64xf32>
    %129 = tpu.matmul %126, %128, %cst_107 {dimension_numbers = #tpu.dot_dimension_numbers<[1], [0], [0], [1], [0, 0, 1, 1], [], []>} : vector<9x32xbf16>, vector<32x64xbf16>, vector<9x64xf32> -> vector<9x64xf32>
    %130 = arith.addf %122, %129 : vector<9x64xf32>
    %c12 = arith.constant 12 : index
    %c0_108 = arith.constant 0 : index
    %c0_109 = arith.constant 0 : index
    %131 = vector.load %arg4[%c12, %c0_108, %c0_109] : memref<16x9x64xbf16, #tpu.memory_space<vmem>>, vector<1x9x64xbf16>
    %132 = vector.shape_cast %131 : vector<1x9x64xbf16> to vector<9x64xbf16>
    %cst_110 = arith.constant dense<0.000000e+00> : vector<9x32xf32>
    %133 = tpu.matmul %132, %31, %cst_110 {dimension_numbers = #tpu.dot_dimension_numbers<[1], [0], [0], [1], [0, 0, 1, 1], [], []>} : vector<9x64xbf16>, vector<64x32xbf16>, vector<9x32xf32> -> vector<9x32xf32>
    %134 = arith.truncf %133 : vector<9x32xf32> to vector<9x32xbf16>
    %c12_111 = arith.constant 12 : index
    %c0_112 = arith.constant 0 : index
    %c0_113 = arith.constant 0 : index
    %135 = vector.load %arg5[%c12_111, %c0_112, %c0_113] : memref<16x32x64xbf16, #tpu.memory_space<vmem>>, vector<1x32x64xbf16>
    %136 = vector.shape_cast %135 : vector<1x32x64xbf16> to vector<32x64xbf16>
    %cst_114 = arith.constant dense<0.000000e+00> : vector<9x64xf32>
    %137 = tpu.matmul %134, %136, %cst_114 {dimension_numbers = #tpu.dot_dimension_numbers<[1], [0], [0], [1], [0, 0, 1, 1], [], []>} : vector<9x32xbf16>, vector<32x64xbf16>, vector<9x64xf32> -> vector<9x64xf32>
    %138 = arith.addf %130, %137 : vector<9x64xf32>
    %c13 = arith.constant 13 : index
    %c0_115 = arith.constant 0 : index
    %c0_116 = arith.constant 0 : index
    %139 = vector.load %arg4[%c13, %c0_115, %c0_116] : memref<16x9x64xbf16, #tpu.memory_space<vmem>>, vector<1x9x64xbf16>
    %140 = vector.shape_cast %139 : vector<1x9x64xbf16> to vector<9x64xbf16>
    %cst_117 = arith.constant dense<0.000000e+00> : vector<9x32xf32>
    %141 = tpu.matmul %140, %31, %cst_117 {dimension_numbers = #tpu.dot_dimension_numbers<[1], [0], [0], [1], [0, 0, 1, 1], [], []>} : vector<9x64xbf16>, vector<64x32xbf16>, vector<9x32xf32> -> vector<9x32xf32>
    %142 = arith.truncf %141 : vector<9x32xf32> to vector<9x32xbf16>
    %c13_118 = arith.constant 13 : index
    %c0_119 = arith.constant 0 : index
    %c0_120 = arith.constant 0 : index
    %143 = vector.load %arg5[%c13_118, %c0_119, %c0_120] : memref<16x32x64xbf16, #tpu.memory_space<vmem>>, vector<1x32x64xbf16>
    %144 = vector.shape_cast %143 : vector<1x32x64xbf16> to vector<32x64xbf16>
    %cst_121 = arith.constant dense<0.000000e+00> : vector<9x64xf32>
    %145 = tpu.matmul %142, %144, %cst_121 {dimension_numbers = #tpu.dot_dimension_numbers<[1], [0], [0], [1], [0, 0, 1, 1], [], []>} : vector<9x32xbf16>, vector<32x64xbf16>, vector<9x64xf32> -> vector<9x64xf32>
    %146 = arith.addf %138, %145 : vector<9x64xf32>
    %c14 = arith.constant 14 : index
    %c0_122 = arith.constant 0 : index
    %c0_123 = arith.constant 0 : index
    %147 = vector.load %arg4[%c14, %c0_122, %c0_123] : memref<16x9x64xbf16, #tpu.memory_space<vmem>>, vector<1x9x64xbf16>
    %148 = vector.shape_cast %147 : vector<1x9x64xbf16> to vector<9x64xbf16>
    %cst_124 = arith.constant dense<0.000000e+00> : vector<9x32xf32>
    %149 = tpu.matmul %148, %31, %cst_124 {dimension_numbers = #tpu.dot_dimension_numbers<[1], [0], [0], [1], [0, 0, 1, 1], [], []>} : vector<9x64xbf16>, vector<64x32xbf16>, vector<9x32xf32> -> vector<9x32xf32>
    %150 = arith.truncf %149 : vector<9x32xf32> to vector<9x32xbf16>
    %c14_125 = arith.constant 14 : index
    %c0_126 = arith.constant 0 : index
    %c0_127 = arith.constant 0 : index
    %151 = vector.load %arg5[%c14_125, %c0_126, %c0_127] : memref<16x32x64xbf16, #tpu.memory_space<vmem>>, vector<1x32x64xbf16>
    %152 = vector.shape_cast %151 : vector<1x32x64xbf16> to vector<32x64xbf16>
    %cst_128 = arith.constant dense<0.000000e+00> : vector<9x64xf32>
    %153 = tpu.matmul %150, %152, %cst_128 {dimension_numbers = #tpu.dot_dimension_numbers<[1], [0], [0], [1], [0, 0, 1, 1], [], []>} : vector<9x32xbf16>, vector<32x64xbf16>, vector<9x64xf32> -> vector<9x64xf32>
    %154 = arith.addf %146, %153 : vector<9x64xf32>
    %c15 = arith.constant 15 : index
    %c0_129 = arith.constant 0 : index
    %c0_130 = arith.constant 0 : index
    %155 = vector.load %arg4[%c15, %c0_129, %c0_130] : memref<16x9x64xbf16, #tpu.memory_space<vmem>>, vector<1x9x64xbf16>
    %156 = vector.shape_cast %155 : vector<1x9x64xbf16> to vector<9x64xbf16>
    %cst_131 = arith.constant dense<0.000000e+00> : vector<9x32xf32>
    %157 = tpu.matmul %156, %31, %cst_131 {dimension_numbers = #tpu.dot_dimension_numbers<[1], [0], [0], [1], [0, 0, 1, 1], [], []>} : vector<9x64xbf16>, vector<64x32xbf16>, vector<9x32xf32> -> vector<9x32xf32>
    %158 = arith.truncf %157 : vector<9x32xf32> to vector<9x32xbf16>
    %c15_132 = arith.constant 15 : index
    %c0_133 = arith.constant 0 : index
    %c0_134 = arith.constant 0 : index
    %159 = vector.load %arg5[%c15_132, %c0_133, %c0_134] : memref<16x32x64xbf16, #tpu.memory_space<vmem>>, vector<1x32x64xbf16>
    %160 = vector.shape_cast %159 : vector<1x32x64xbf16> to vector<32x64xbf16>
    %cst_135 = arith.constant dense<0.000000e+00> : vector<9x64xf32>
    %161 = tpu.matmul %158, %160, %cst_135 {dimension_numbers = #tpu.dot_dimension_numbers<[1], [0], [0], [1], [0, 0, 1, 1], [], []>} : vector<9x32xbf16>, vector<32x64xbf16>, vector<9x64xf32> -> vector<9x64xf32>
    %162 = arith.addf %154, %161 : vector<9x64xf32>
    %cst_136 = arith.constant 0.000000e+00 : f32
    %163 = vector.broadcast %cst_136 : f32 to vector<9x64xf32>
    %164 = arith.maximumf %162, %163 : vector<9x64xf32>
    %165 = arith.truncf %164 : vector<9x64xf32> to vector<9x64xbf16>
    %c0_137 = arith.constant 0 : index
    %c0_138 = arith.constant 0 : index
    %166 = vector.load %arg8[%c0_137, %c0_138] : memref<1x64xf32, #tpu.memory_space<vmem>>, vector<1x64xf32>
    %167 = vector.extract_strided_slice %165 {offsets = [0, 0], sizes = [1, 64], strides = [1, 1]} : vector<9x64xbf16> to vector<1x64xbf16>
    %c0_139 = arith.constant 0 : index
    %c0_140 = arith.constant 0 : index
    %c0_141 = arith.constant 0 : index
    %168 = vector.load %arg7[%c0_139, %c0_140, %c0_141] : memref<9x64x64xbf16, #tpu.memory_space<vmem>>, vector<1x64x64xbf16>
    %169 = vector.shape_cast %168 : vector<1x64x64xbf16> to vector<64x64xbf16>
    %cst_142 = arith.constant dense<0.000000e+00> : vector<1x64xf32>
    %170 = tpu.matmul %167, %169, %cst_142 {dimension_numbers = #tpu.dot_dimension_numbers<[1], [0], [0], [1], [0, 0, 1, 1], [], []>} : vector<1x64xbf16>, vector<64x64xbf16>, vector<1x64xf32> -> vector<1x64xf32>
    %171 = arith.addf %166, %170 : vector<1x64xf32>
    %172 = vector.extract_strided_slice %165 {offsets = [1, 0], sizes = [1, 64], strides = [1, 1]} : vector<9x64xbf16> to vector<1x64xbf16>
    %c1_143 = arith.constant 1 : index
    %c0_144 = arith.constant 0 : index
    %c0_145 = arith.constant 0 : index
    %173 = vector.load %arg7[%c1_143, %c0_144, %c0_145] : memref<9x64x64xbf16, #tpu.memory_space<vmem>>, vector<1x64x64xbf16>
    %174 = vector.shape_cast %173 : vector<1x64x64xbf16> to vector<64x64xbf16>
    %cst_146 = arith.constant dense<0.000000e+00> : vector<1x64xf32>
    %175 = tpu.matmul %172, %174, %cst_146 {dimension_numbers = #tpu.dot_dimension_numbers<[1], [0], [0], [1], [0, 0, 1, 1], [], []>} : vector<1x64xbf16>, vector<64x64xbf16>, vector<1x64xf32> -> vector<1x64xf32>
    %176 = arith.addf %171, %175 : vector<1x64xf32>
    %177 = vector.extract_strided_slice %165 {offsets = [2, 0], sizes = [1, 64], strides = [1, 1]} : vector<9x64xbf16> to vector<1x64xbf16>
    %c2_147 = arith.constant 2 : index
    %c0_148 = arith.constant 0 : index
    %c0_149 = arith.constant 0 : index
    %178 = vector.load %arg7[%c2_147, %c0_148, %c0_149] : memref<9x64x64xbf16, #tpu.memory_space<vmem>>, vector<1x64x64xbf16>
    %179 = vector.shape_cast %178 : vector<1x64x64xbf16> to vector<64x64xbf16>
    %cst_150 = arith.constant dense<0.000000e+00> : vector<1x64xf32>
    %180 = tpu.matmul %177, %179, %cst_150 {dimension_numbers = #tpu.dot_dimension_numbers<[1], [0], [0], [1], [0, 0, 1, 1], [], []>} : vector<1x64xbf16>, vector<64x64xbf16>, vector<1x64xf32> -> vector<1x64xf32>
    %181 = arith.addf %176, %180 : vector<1x64xf32>
    %182 = vector.extract_strided_slice %165 {offsets = [3, 0], sizes = [1, 64], strides = [1, 1]} : vector<9x64xbf16> to vector<1x64xbf16>
    %c3_151 = arith.constant 3 : index
    %c0_152 = arith.constant 0 : index
    %c0_153 = arith.constant 0 : index
    %183 = vector.load %arg7[%c3_151, %c0_152, %c0_153] : memref<9x64x64xbf16, #tpu.memory_space<vmem>>, vector<1x64x64xbf16>
    %184 = vector.shape_cast %183 : vector<1x64x64xbf16> to vector<64x64xbf16>
    %cst_154 = arith.constant dense<0.000000e+00> : vector<1x64xf32>
    %185 = tpu.matmul %182, %184, %cst_154 {dimension_numbers = #tpu.dot_dimension_numbers<[1], [0], [0], [1], [0, 0, 1, 1], [], []>} : vector<1x64xbf16>, vector<64x64xbf16>, vector<1x64xf32> -> vector<1x64xf32>
    %186 = arith.addf %181, %185 : vector<1x64xf32>
    %187 = vector.extract_strided_slice %165 {offsets = [4, 0], sizes = [1, 64], strides = [1, 1]} : vector<9x64xbf16> to vector<1x64xbf16>
    %c4_155 = arith.constant 4 : index
    %c0_156 = arith.constant 0 : index
    %c0_157 = arith.constant 0 : index
    %188 = vector.load %arg7[%c4_155, %c0_156, %c0_157] : memref<9x64x64xbf16, #tpu.memory_space<vmem>>, vector<1x64x64xbf16>
    %189 = vector.shape_cast %188 : vector<1x64x64xbf16> to vector<64x64xbf16>
    %cst_158 = arith.constant dense<0.000000e+00> : vector<1x64xf32>
    %190 = tpu.matmul %187, %189, %cst_158 {dimension_numbers = #tpu.dot_dimension_numbers<[1], [0], [0], [1], [0, 0, 1, 1], [], []>} : vector<1x64xbf16>, vector<64x64xbf16>, vector<1x64xf32> -> vector<1x64xf32>
    %191 = arith.addf %186, %190 : vector<1x64xf32>
    %192 = vector.extract_strided_slice %165 {offsets = [5, 0], sizes = [1, 64], strides = [1, 1]} : vector<9x64xbf16> to vector<1x64xbf16>
    %c5_159 = arith.constant 5 : index
    %c0_160 = arith.constant 0 : index
    %c0_161 = arith.constant 0 : index
    %193 = vector.load %arg7[%c5_159, %c0_160, %c0_161] : memref<9x64x64xbf16, #tpu.memory_space<vmem>>, vector<1x64x64xbf16>
    %194 = vector.shape_cast %193 : vector<1x64x64xbf16> to vector<64x64xbf16>
    %cst_162 = arith.constant dense<0.000000e+00> : vector<1x64xf32>
    %195 = tpu.matmul %192, %194, %cst_162 {dimension_numbers = #tpu.dot_dimension_numbers<[1], [0], [0], [1], [0, 0, 1, 1], [], []>} : vector<1x64xbf16>, vector<64x64xbf16>, vector<1x64xf32> -> vector<1x64xf32>
    %196 = arith.addf %191, %195 : vector<1x64xf32>
    %197 = vector.extract_strided_slice %165 {offsets = [6, 0], sizes = [1, 64], strides = [1, 1]} : vector<9x64xbf16> to vector<1x64xbf16>
    %c6_163 = arith.constant 6 : index
    %c0_164 = arith.constant 0 : index
    %c0_165 = arith.constant 0 : index
    %198 = vector.load %arg7[%c6_163, %c0_164, %c0_165] : memref<9x64x64xbf16, #tpu.memory_space<vmem>>, vector<1x64x64xbf16>
    %199 = vector.shape_cast %198 : vector<1x64x64xbf16> to vector<64x64xbf16>
    %cst_166 = arith.constant dense<0.000000e+00> : vector<1x64xf32>
    %200 = tpu.matmul %197, %199, %cst_166 {dimension_numbers = #tpu.dot_dimension_numbers<[1], [0], [0], [1], [0, 0, 1, 1], [], []>} : vector<1x64xbf16>, vector<64x64xbf16>, vector<1x64xf32> -> vector<1x64xf32>
    %201 = arith.addf %196, %200 : vector<1x64xf32>
    %202 = vector.extract_strided_slice %165 {offsets = [7, 0], sizes = [1, 64], strides = [1, 1]} : vector<9x64xbf16> to vector<1x64xbf16>
    %c7_167 = arith.constant 7 : index
    %c0_168 = arith.constant 0 : index
    %c0_169 = arith.constant 0 : index
    %203 = vector.load %arg7[%c7_167, %c0_168, %c0_169] : memref<9x64x64xbf16, #tpu.memory_space<vmem>>, vector<1x64x64xbf16>
    %204 = vector.shape_cast %203 : vector<1x64x64xbf16> to vector<64x64xbf16>
    %cst_170 = arith.constant dense<0.000000e+00> : vector<1x64xf32>
    %205 = tpu.matmul %202, %204, %cst_170 {dimension_numbers = #tpu.dot_dimension_numbers<[1], [0], [0], [1], [0, 0, 1, 1], [], []>} : vector<1x64xbf16>, vector<64x64xbf16>, vector<1x64xf32> -> vector<1x64xf32>
    %206 = arith.addf %201, %205 : vector<1x64xf32>
    %207 = vector.extract_strided_slice %165 {offsets = [8, 0], sizes = [1, 64], strides = [1, 1]} : vector<9x64xbf16> to vector<1x64xbf16>
    %c8_171 = arith.constant 8 : index
    %c0_172 = arith.constant 0 : index
    %c0_173 = arith.constant 0 : index
    %208 = vector.load %arg7[%c8_171, %c0_172, %c0_173] : memref<9x64x64xbf16, #tpu.memory_space<vmem>>, vector<1x64x64xbf16>
    %209 = vector.shape_cast %208 : vector<1x64x64xbf16> to vector<64x64xbf16>
    %cst_174 = arith.constant dense<0.000000e+00> : vector<1x64xf32>
    %210 = tpu.matmul %207, %209, %cst_174 {dimension_numbers = #tpu.dot_dimension_numbers<[1], [0], [0], [1], [0, 0, 1, 1], [], []>} : vector<1x64xbf16>, vector<64x64xbf16>, vector<1x64xf32> -> vector<1x64xf32>
    %211 = arith.addf %206, %210 : vector<1x64xf32>
    %cst_175 = arith.constant 0.000000e+00 : f32
    %212 = vector.broadcast %cst_175 : f32 to vector<1x64xf32>
    %213 = arith.maximumf %211, %212 : vector<1x64xf32>
    %214 = arith.truncf %213 : vector<1x64xf32> to vector<1x64xbf16>
    %c0_176 = arith.constant 0 : index
    %c0_177 = arith.constant 0 : index
    %215 = vector.load %arg9[%c0_176, %c0_177] : memref<64x512xbf16, #tpu.memory_space<vmem>>, vector<64x512xbf16>
    %cst_178 = arith.constant dense<0.000000e+00> : vector<1x512xf32>
    %216 = tpu.matmul %214, %215, %cst_178 {dimension_numbers = #tpu.dot_dimension_numbers<[1], [0], [0], [1], [0, 0, 1, 1], [], []>} : vector<1x64xbf16>, vector<64x512xbf16>, vector<1x512xf32> -> vector<1x512xf32>
    %c0_179 = arith.constant 0 : index
    %c0_180 = arith.constant 0 : index
    %217 = vector.load %arg10[%c0_179, %c0_180] : memref<1x512xf32, #tpu.memory_space<vmem>>, vector<1x512xf32>
    %218 = arith.addf %216, %217 : vector<1x512xf32>
    %cst_181 = arith.constant 0.000000e+00 : f32
    %219 = vector.broadcast %cst_181 : f32 to vector<1x512xf32>
    %220 = arith.maximumf %218, %219 : vector<1x512xf32>
    %221 = arith.truncf %220 : vector<1x512xf32> to vector<1x512xbf16>
    %c0_182 = arith.constant 0 : index
    %c0_183 = arith.constant 0 : index
    %222 = vector.load %arg11[%c0_182, %c0_183] : memref<512x128xbf16, #tpu.memory_space<vmem>>, vector<512x128xbf16>
    %cst_184 = arith.constant dense<0.000000e+00> : vector<1x128xf32>
    %223 = tpu.matmul %221, %222, %cst_184 {dimension_numbers = #tpu.dot_dimension_numbers<[1], [0], [0], [1], [0, 0, 1, 1], [], []>} : vector<1x512xbf16>, vector<512x128xbf16>, vector<1x128xf32> -> vector<1x128xf32>
    %c0_185 = arith.constant 0 : index
    %c0_186 = arith.constant 0 : index
    %224 = vector.load %arg12[%c0_185, %c0_186] : memref<1x128xf32, #tpu.memory_space<vmem>>, vector<1x128xf32>
    %225 = arith.addf %223, %224 : vector<1x128xf32>
    %c0_187 = arith.constant 0 : index
    %c0_188 = arith.constant 0 : index
    %c0_189 = arith.constant 0 : index
    %226 = vector.load %arg13[%c0_187, %c0_188, %c0_189] : memref<1x1x128xf32, #tpu.memory_space<vmem>>, vector<1x1x128xf32>
    %227 = vector.shape_cast %226 : vector<1x1x128xf32> to vector<1x128xf32>
    %228 = vector.shape_cast %225 : vector<1x128xf32> to vector<1x1x128xf32>
    tpu.vector_store %arg13[%c0_187, %c0_188, %c0_189], %228 {strides = array<i32>} : memref<1x1x128xf32, #tpu.memory_space<vmem>>, vector<1x1x128xf32>,
    return
  }
  func.func @transform_0(%arg0: i32) -> (i32, i32, i32, i32) {
    %c0_i32 = arith.constant 0 : i32
    %c0_i32_0 = arith.constant 0 : i32
    %c0_i32_1 = arith.constant 0 : i32
    %c0_i32_2 = arith.constant 0 : i32
    return %arg0, %c0_i32, %c0_i32_0, %c0_i32_1 : i32, i32, i32, i32
  }
  func.func @transform_1(%arg0: i32) -> (i32, i32, i32) {
    %c0_i32 = arith.constant 0 : i32
    %c0_i32_0 = arith.constant 0 : i32
    %c0_i32_1 = arith.constant 0 : i32
    %c0_i32_2 = arith.constant 0 : i32
    return %c0_i32, %c0_i32_0, %c0_i32_1 : i32, i32, i32
  }
  func.func @transform_2(%arg0: i32) -> (i32, i32) {
    %c0_i32 = arith.constant 0 : i32
    %c0_i32_0 = arith.constant 0 : i32
    %c0_i32_1 = arith.constant 0 : i32
    return %c0_i32, %c0_i32_0 : i32, i32
  }
  func.func @transform_3(%arg0: i32) -> (i32, i32, i32) {
    %c0_i32 = arith.constant 0 : i32
    %c0_i32_0 = arith.constant 0 : i32
    %c0_i32_1 = arith.constant 0 : i32
    %c0_i32_2 = arith.constant 0 : i32
    return %c0_i32, %c0_i32_0, %c0_i32_1 : i32, i32, i32
  }
  func.func @transform_4(%arg0: i32) -> (i32, i32, i32) {
    %c0_i32 = arith.constant 0 : i32
    %c0_i32_0 = arith.constant 0 : i32
    %c0_i32_1 = arith.constant 0 : i32
    %c0_i32_2 = arith.constant 0 : i32
    return %c0_i32, %c0_i32_0, %c0_i32_1 : i32, i32, i32
  }
  func.func @transform_5(%arg0: i32) -> (i32, i32) {
    %c0_i32 = arith.constant 0 : i32
    %c0_i32_0 = arith.constant 0 : i32
    %c0_i32_1 = arith.constant 0 : i32
    return %c0_i32, %c0_i32_0 : i32, i32
  }
  func.func @transform_6(%arg0: i32) -> (i32, i32, i32) {
    %c0_i32 = arith.constant 0 : i32
    %c0_i32_0 = arith.constant 0 : i32
    %c0_i32_1 = arith.constant 0 : i32
    %c0_i32_2 = arith.constant 0 : i32
    return %c0_i32, %c0_i32_0, %c0_i32_1 : i32, i32, i32
  }
  func.func @transform_7(%arg0: i32) -> (i32, i32) {
    %c0_i32 = arith.constant 0 : i32
    %c0_i32_0 = arith.constant 0 : i32
    %c0_i32_1 = arith.constant 0 : i32
    return %c0_i32, %c0_i32_0 : i32, i32
  }
  func.func @transform_8(%arg0: i32) -> (i32, i32) {
    %c0_i32 = arith.constant 0 : i32
    %c0_i32_0 = arith.constant 0 : i32
    %c0_i32_1 = arith.constant 0 : i32
    return %c0_i32, %c0_i32_0 : i32, i32
  }
  func.func @transform_9(%arg0: i32) -> (i32, i32) {
    %c0_i32 = arith.constant 0 : i32
    %c0_i32_0 = arith.constant 0 : i32
    %c0_i32_1 = arith.constant 0 : i32
    return %c0_i32, %c0_i32_0 : i32, i32
  }
  func.func @transform_10(%arg0: i32) -> (i32, i32) {
    %c0_i32 = arith.constant 0 : i32
    %c0_i32_0 = arith.constant 0 : i32
    %c0_i32_1 = arith.constant 0 : i32
    return %c0_i32, %c0_i32_0 : i32, i32
  }
  func.func @transform_11(%arg0: i32) -> (i32, i32) {
    %c0_i32 = arith.constant 0 : i32
    %c0_i32_0 = arith.constant 0 : i32
    %c0_i32_1 = arith.constant 0 : i32
    return %c0_i32, %c0_i32_0 : i32, i32
  }
  func.func @transform_12(%arg0: i32) -> (i32, i32, i32) {
    %c0_i32 = arith.constant 0 : i32
    %c0_i32_0 = arith.constant 0 : i32
    %c0_i32_1 = arith.constant 0 : i32
    return %arg0, %c0_i32, %c0_i32_0 : i32, i32, i32
  }
}

</mosaic_0001>

<bundles_post_ra>
// kernel: cnn_dqn_forward.1
= control target key start
LH: loop header
LB: loop body
LE: loop exit
PB: predicated region body
PF: predicated region fallthrough
CT: control target
= control target key end

     0   :  { %s6927_s0 = inlined_call_operand.vmem [shape: bf16[2,9,9,64], index: 0, kind: input, shape index: {}]   ;;  %s6928_s1 = inlined_call_operand.vmem [shape: bf16[4,64,32], index: 1, kind: input, shape index: {}]   ;;  %s6929_s2 = inlined_call_operand.vmem [shape: f32[1,32], index: 2, kind: input, shape index: {}]   ;;  %s6930_s3 = inlined_call_operand.vmem [shape: bf16[16,9,64], index: 3, kind: input, shape index: {}]   ;;  %s6931_s4 = inlined_call_operand.vmem [shape: bf16[16,32,64], index: 4, kind: input, shape index: {}]   ;;  %s6932_s5 = inlined_call_operand.vmem [shape: f32[1,64], index: 5, kind: input, shape index: {}]   ;;  %s6933_s6 = inlined_call_operand.vmem [shape: bf16[9,64,64], index: 6, kind: input, shape index: {}]   ;;  %s6934_s7 = inlined_call_operand.vmem [shape: f32[1,64], index: 7, kind: input, shape index: {}]   ;;  %s6935_s8 = inlined_call_operand.vmem [shape: bf16[64,512], index: 8, kind: input, shape index: {}]   ;;  %s6936_s9 = inlined_call_operand.vmem [shape: f32[1,512], index: 9, kind: input, shape index: {}]   ;;  %s6937_s10 = inlined_call_operand.vmem [shape: bf16[512,128], index: 10, kind: input, shape index: {}]   ;;  %s6938_s11 = inlined_call_operand.vmem [shape: f32[1,128], index: 11, kind: input, shape index: {}]   ;;  %s6939_s12 = inlined_call_operand.hbm [shape: f32[2,1,128], index: 12, kind: output, shape index: {}]  }
   0x1   :  { %6940 = sst [smem:[#allocation6_spill]] %s6927_s0 }
   0x2   :  { %17 = vsyncpa [#allocation3], 0 }
   0x3   :  { %19 = vsyncpa [#allocation3 + $0x1], 0  ;;  %s5899_s21 = smov 0   ;;  %s5901_s22 = smov 0  }
   0x4   :  { %s5903_s23 = smov 0   ;;  %s5905_s24 = smov 0  }
   0x5 LB: > { %s5920_s25 = sadd.s32 4294967295, %s5828_s24   ;;  %s4280_s26 = sadd.s32 4294967294, %s5828_s24   ;;  %s5828_s24 = sphi %s5905_s24, %s6951_s24   ;;  %s5824_s23 = sphi %s5903_s23, %s6950_s23   ;;  %s5820_s22 = sphi %s5901_s22, %s6949_s22   ;;  %s5816_s21 = sphi %s5899_s21, %s6948_s21  }
   0x6   : > { %s5924_s27 = sadd.s32 1, %s5828_s24   ;;  %s289_s28 = sadd.s32 1, %s5824_s23 }
   0x7   : > { %s286_s29 = ssub.s32 %s5828_s24, %s5924_s27  ;;  %p299_p0 = scmp.ne.s32.totalorder %s5824_s23, %s5820_s22 }
   0x8   : > { %p287_p1 = scmp.eq.s32.totalorder %s286_s29, 0  ;;  %p300_p2 = scmp.eq.s32.totalorder %s5920_s25, 1 }
   0x9   : > { %p305_p3 = scmp.ne.s32.totalorder %s5820_s22, %s5816_s21  ;;  %p306_p4 = scmp.eq.s32.totalorder %s4280_s26, 1 }
   0xa   : > { %s5935_s30 = scalar_select %p287_p1, %s5824_s23, %s289_s28  }
   0xb   : > { %p5937_p5 = por %p300_p2, %p299_p0  ;;  %p5941_p6 = por %p306_p4, %p305_p3 }
   0xc   : > { %6941 = sst [smem:[#allocation5_spill]] %s5935_s30  ;;  %p4283_p7 = scmp.ge.s32.totalorder %s5828_s24, 1 }
   0xd   : > { %p365_p8 = scmp.lt.s32.totalorder %s5828_s24, 3 }
   0xf   : > { %p366_p9 = pnand %p4283_p7, %p365_p8 }
  0x10   : > { %v5602_v0 = vld [vmem:[%s6928_s1 + $0x20] sm:$0xff] (!%p366_p9)   ;;  %p406_p10 = scmp.lt.s32.totalorder (!%p366_p9), %s5920_s25, 1  ;;  %v5603_v1 = vld [vmem:[%s6928_s1 + $0x28] sm:$0xff] (!%p366_p9)   ;;  %v5604_v2 = vld [vmem:[%s6928_s1 + $0x30] sm:$0xff] (!%p366_p9)   ;;  %s6944_s0 = sld [smem:[#allocation6_spill]] (!%p366_p9)  ;;  %vm489_vm0 = vcmask (!%p366_p9), 523264  }
  0x11   : > { %369 = sbr.rel (%p366_p9) target bundleno = 2861 (0xb2d), region = 68  ;;  %4956 = vmatprep.subr.bf16.mxu0 (!%p366_p9), %v5602_v0  ;;  %v5605_v6 = vld [vmem:[%s6928_s1 + $0x38] sm:$0xff] (!%p366_p9)   ;;  %vm575_vm1 = vsmask.f32 (!%p366_p9), 3328  ;;  %vm576_vm2 = vsmask.f32 (!%p366_p9), 7440 }
  0x12   : > { %4957 = vmatpush3.bf16.msra.mxu0 (!%p366_p9), %v5602_v0  ;;  %v5984_v16 = vld [vmem:[%s6928_s1 + $0x40] sm:$0xff] (!%p366_p9)   ;;  %vm5999_vm3 = vmor (!%p366_p9), %vm575_vm1, %vm576_vm2  ;;  %vm5831_vm4 = vmmov (!%p366_p9), 0   ;;  %vm1168_vm5 = vcmask (!%p366_p9), 261120   ;;  %s4688_s30 = sshll.u32 (!%p366_p9), %s5920_s25, 4  ;;  %s5833_s16 = smov (!%p366_p9), [#allocation2]  }
  0x13   : > { %4958 = vmatprep.subr.bf16.mxu0 (!%p366_p9), %v5603_v1  ;;  %v5609_v61 = vld [vmem:[%s6928_s1] sm:$0xff] (!%p366_p9)   ;;  %s5770_s17 = sshll.u32 (!%p366_p9), %s5833_s16, 4  ;;  %s5771_s17 = int_to_ptr.vmem [resolvable:$false] %s5770_s17 }
  0x14   : > { %4940 = vmatprep.subr.bf16.mxu1 (!%p366_p9), %v5609_v61 }
  0x15   : > { %4941 = vmatpush3.bf16.msra.mxu1 (!%p366_p9), %v5609_v61 }
  0x16   : > { %4959 = vmatpush3.bf16.msra.mxu0 (!%p366_p9), %v5603_v1 }
  0x17   : > { %4960 = vmatprep.subr.bf16.mxu0 (!%p366_p9), %v5604_v2 }
  0x18   : > { %s407_s19 = scalar_select %p406_p10, %s5920_s25, 1 }
  0x1a   : > { %s5559_s28 = smul.u32 72, %s407_s19  ;;  %4961 = vmatpush3.bf16.msra.mxu0 %v5604_v2 }
  0x1b   : > { %4962 = vmatprep.subr.bf16.mxu0 %v5605_v6 }
  0x1c   : > { %s5961_s15 = scalar_lea.vmem %s6944_s0, %s5559_s28  ;;  %s6885_s28 = scalar_lea.hbm %s6939_s12, %s4688_s30 }
  0x1d   : > { %v412_v3 = vld [vmem:[%s5961_s15] sm:$0xf]  ;;  %v413_v4 = vld [vmem:[%s5961_s15 + $0x4] sm:$0x1]  ;;  %v5966_v5 = vld [vmem:[%s5961_s15 + $0x8] sm:$0xf] }
  0x1e   : > { %v415_v7 = vld [vmem:[%s5961_s15 + $0xc] sm:$0x1]  ;;  %v5973_v8 = vld [vmem:[%s5961_s15 + $0x10] sm:$0xf]  ;;  %v4286_v9 = vcombine.low %v412_v3, %v5966_v5  ;;  %v417_v10 = vld [vmem:[%s5961_s15 + $0x14] sm:$0x1]  ;;  %4963 = vmatpush3.bf16.msra.mxu0 %v5605_v6 }
  0x1f   : > { %v5978_v11 = vld [vmem:[%s5961_s15 + $0x18] sm:$0xf]  ;;  %v579_v12 = vshrl.u32 %v412_v3, 16  ;;  %v582_v13 = vshll.u32 %v412_v3, 16  ;;  %v588_v14 = vshll.u32 %v413_v4, 16  ;;  %v593_v15 = vshrl.u32 %v5966_v5, 16  ;;  %4972 = vmatprep.subr.bf16.mxu0 %v5984_v16 }
  0x20   : > { %4948 = vmatprep.mubr.msk.bf16.mxu1 %vm489_vm0, %v4286_v9  ;;  %v419_v17 = vld [vmem:[%s5961_s15 + $0x1c] sm:$0x1]  ;;  %v596_v18 = vshll.u32 %v5966_v5, 16  ;;  %v602_v19 = vshll.u32 %v415_v7, 16  ;;  %v607_v20 = vshrl.u32 %v5973_v8, 16  ;;  %v610_v21 = vshll.u32 %v5973_v8, 16 }
  0x21   : > { %v5992_v22 = vld [vmem:[%s5961_s15 + $0x20] sm:$0xf]  ;;  %v581_v23 = vrot.slane %v579_v12, 4  ;;  %v584_v24 = vrot.slane %v582_v13, 5  ;;  %v590_v25 = vrot.slane %v588_v14, 5  ;;  %v595_v26 = vrot.slane %v593_v15, 4 }
  0x22   : > { %v598_v27 = vrot.slane %v596_v18, 5  ;;  %v604_v28 = vrot.slane %v602_v19, 5  ;;  %v609_v29 = vrot.slane %v607_v20, 4  ;;  %v612_v30 = vrot.slane %v610_v21, 5  ;;  %v421_v35 = vld [vmem:[%s5961_s15 + $0x24] sm:$0x1] }
  0x23   : > { %v585_v31 = vor.u32 %v584_v24, %v581_v23  ;;  %v616_v32 = vshll.u32 %v417_v10, 16  ;;  %v621_v33 = vshrl.u32 %v5978_v11, 16  ;;  %v624_v34 = vshll.u32 %v5978_v11, 16  ;;  %v6005_v41 = vld [vmem:[%s5961_s15 + $0x28] sm:$0xf]  ;;  %s5772_s0 = scalar_lea.vmem %s5771_s17, 32 }
  0x24   : > { %v599_v37 = vor.u32 %v598_v27, %v595_v26  ;;  %v613_v38 = vor.u32 %v612_v30, %v609_v29  ;;  %v630_v39 = vshll.u32 %v419_v17, 16  ;;  %v635_v40 = vshrl.u32 %v5992_v22, 16  ;;  %v423_v46 = vld [vmem:[%s5961_s15 + $0x2c] sm:$0x1]  ;;  %v6010_v51 = vld [vmem:[%s5961_s15 + $0x30] sm:$0xf] }
  0x25   : > { %v586_v42 = vrot.slane %v585_v31, 4  ;;  %v618_v43 = vrot.slane %v616_v32, 5  ;;  %v623_v44 = vrot.slane %v621_v33, 4  ;;  %v626_v45 = vrot.slane %v624_v34, 5  ;;  %v425_v56 = vld [vmem:[%s5961_s15 + $0x34] sm:$0x1] }
  0x26   : > { %v600_v47 = vrot.slane %v599_v37, 4  ;;  %v614_v48 = vrot.slane %v613_v38, 4  ;;  %v632_v49 = vrot.slane %v630_v39, 5  ;;  %v637_v50 = vrot.slane %v635_v40, 4  ;;  %v6023_v60 = vld [vmem:[%s5961_s15 + $0x38] sm:$0xf] }
  0x27   : > { %v591_v52 = vsel %vm5999_vm3, %v586_v42, %v590_v25  ;;  %v627_v53 = vor.u32 %v626_v45, %v623_v44  ;;  %v638_v54 = vshll.u32 %v5992_v22, 16  ;;  %v644_v55 = vshll.u32 %v421_v35, 16  ;;  %v427_v2 = vld [vmem:[%s5961_s15 + $0x3c] sm:$0x1]  ;;  %v5611_v3 = vld [vmem:[%s6928_s1 + $0x8] sm:$0xff]   ;;  %v5608_v29 = vld [vmem:[%s6928_s1 + $0x50] sm:$0xff]  }
  0x28   : > { %v6018_v57 = vsel %vm5999_vm3, %v600_v47, %v604_v28  ;;  %v649_v58 = vshrl.u32 %v6005_v41, 16  ;;  %v652_v59 = vshll.u32 %v6005_v41, 16  ;;  %v6030_v62 = vsel %vm5999_vm3, %v614_v48, %v618_v43  ;;  %v5607_v6 = vld [vmem:[%s6928_s1 + $0x48] sm:$0xff]   ;;  %4942 = vmatprep.subr.bf16.mxu1 %v5611_v3  ;;  %v5615_v30 = vld [vmem:[%s6928_s1 + $0x10] sm:$0xff]   ;;  %v5617_v38 = vld [vmem:[%s6928_s1 + $0x18] sm:$0xff]  }
  0x29   : > { %v628_v63 = vrot.slane %v627_v53, 4  ;;  %v640_v0 = vrot.slane %v638_v54, 5  ;;  %v4306_v1 = vcombine.low %v591_v52, %v6018_v57  ;;  %v646_v4 = vrot.slane %v644_v55, 5  ;;  %4943 = vmatpush3.bf16.msra.mxu1 %v5611_v3  ;;  %v428_v42 = vld [vmem:[%s5961_s15 + $0x40] sm:$0xf] }
  0x2a   : > { %v651_v7 = vrot.slane %v649_v58, 4  ;;  %v654_v9 = vrot.slane %v652_v59, 5  ;;  %v658_v10 = vshll.u32 %v423_v46, 16  ;;  %v663_v14 = vshrl.u32 %v6010_v51, 16  ;;  %4944 = vmatprep.subr.bf16.mxu1 %v5615_v30  ;;  %v429_v46 = vld [vmem:[%s5961_s15 + $0x44] sm:$0x1] }
  0x2b   : > { %v6042_v12 = vsel %vm5999_vm3, %v628_v63, %v632_v49  ;;  %v641_v13 = vor.u32 %v640_v0, %v637_v50  ;;  %4964 = vmatprep.mubr.msk.bf16.mxu0 %vm489_vm0, %v4306_v1  ;;  %v666_v15 = vshll.u32 %v6010_v51, 16  ;;  %v672_v20 = vshll.u32 %v425_v56, 16  ;;  %v5610_v49 = vld [vmem:[%s6928_s1 + $0x58] sm:$0xff]   ;;  %v5614_v56 = vld [vmem:[%s6928_s1 + $0x60] sm:$0xff]   ;;  %s404_s15 = sand.u32 1, %s5820_s22  }
  0x2c   : > { %v4307_v17 = vcombine.low %v6030_v62, %v6042_v12  ;;  %v655_v18 = vor.u32 %v654_v9, %v651_v7  ;;  %v660_v19 = vrot.slane %v658_v10, 5  ;;  %v665_v23 = vrot.slane %v663_v14, 4  ;;  %s405_s18 = scalar_lea.vmem [#allocation2], %s404_s15  ;;  %s4213_s29 = scalar_lea.sflag [#allocation3], %s404_s15 }
  0x2d   : > { %v642_v21 = vrot.slane %v641_v13, 4  ;;  %v668_v24 = vrot.slane %v666_v15, 5  ;;  %v677_v25 = vshrl.u32 %v6023_v60, 16  ;;  %v680_v27 = vshll.u32 %v6023_v60, 16  ;;  %4945 = vmatpush3.bf16.msra.mxu1 %v5615_v30  ;;  %s4225_s19 = sshll.u32 %s405_s18, 4  ;;  %s6887_s19 = int_to_ptr.vmem [resolvable:$true] %s4225_s19 }
  0x2e   : > { %4965 = vmatmul.mubr.msk.bf16.vlgmr.msra.gmra.mrb[0].mxu0 %vm489_vm0, %v4307_v17  ;;  %v656_v26 = vrot.slane %v655_v18, 4  ;;  %v686_v28 = vshll.u32 %v427_v2, 16  ;;  %v674_v33 = vrot.slane %v672_v20, 5  ;;  %v945_v44 = vshrl.u32 %v428_v42, 16  ;;  %4946 = vmatprep.subr.bf16.mxu1 %v5617_v38  ;;  %v4285_v17 = vld [vmem:[%s6929_s2] ss:$0 sm:$0xff]  ;;  %p5773_p0 = scmp.lt.s32.totalorder %s6887_s19, %s5771_s17 }
  0x2f   : > { %v6060_v31 = vsel %vm5999_vm3, %v642_v21, %v646_v4  ;;  %4973 = vmatpush3.bf16.msra.mxu0 %v5984_v16  ;;  %v669_v32 = vor.u32 %v668_v24, %v665_v23  ;;  %v679_v34 = vrot.slane %v677_v25, 4  ;;  %v682_v37 = vrot.slane %v680_v27, 5  ;;  %v5620_v4 = vld [vmem:[%s6928_s1 + $0x70] sm:$0xff]   ;;  %s5766_s25 = scalar_lea.vmem %s6887_s19, 16 }
  0x30   : > { %4974 = vmatprep.subr.bf16.mxu0 %v5607_v6  ;;  %v6065_v35 = vsel %vm5999_vm3, %v656_v26, %v660_v19  ;;  %v688_v40 = vrot.slane %v686_v28, 5  ;;  %v948_v45 = vshll.u32 %v428_v42, 16  ;;  %v947_v50 = vrot.slane %v945_v44, 4  ;;  %p5767_p11 = scmp.ne.s32.totalorder %s6887_s19, %s5766_s25  ;;  %p5774_p1 = scmp.lt.s32.totalorder %s5772_s0, %s5766_s25 }
  0x31   : > { %v4308_v39 = vcombine.low %v6060_v31, %v6065_v35  ;;  %v670_v16 = vrot.slane %v669_v32, 4  ;;  %v683_v43 = vor.u32 %v682_v37, %v679_v34  ;;  %v954_v53 = vshll.u32 %v429_v46, 16  ;;  %4947 = vmatpush3.bf16.msra.mxu1 %v5617_v38 }
  0x32   : > { %v950_v52 = vrot.slane %v948_v45, 5  ;;  %v4326_v55 = vcombine.low %v5966_v5, %v5973_v8  ;;  %v4287_v61 = vcombine.low %v5973_v8, %v5978_v11  ;;  %v4288_v0 = vcombine.low %v5992_v22, %v6005_v41  ;;  %v5616_v8 = vld [vmem:[%s6928_s1 + $0x68] sm:$0xff]   ;;  %p5768_p12 = pnand %p5767_p11, %p5937_p5  ;;  %p5775_p2 = por %p5774_p1, %p5773_p0 }
  0x33   : > { %4975 = vmatpush3.bf16.msra.mxu0 %v5607_v6  ;;  %4968 = vmatprep.mubr.msk.bf16.mxu0 %vm489_vm0, %v4308_v39  ;;  %v675_v47 = vsel %vm5999_vm3, %v670_v16, %v674_v33  ;;  %v684_v48 = vrot.slane %v683_v43, 4  ;;  %v956_v63 = vrot.slane %v954_v53, 5  ;;  %v4327_v5 = vcombine.low %v5978_v11, %v5992_v22  ;;  %v5623_v22 = vld [vmem:[%s6928_s1 + $0x78] sm:$0xff]  }
  0x34   : > { %4976 = vmatprep.subr.bf16.mxu0 %v5608_v29  ;;  %v951_v58 = vor.u32 %v950_v52, %v947_v50  ;;  %4949 = vmatmul.mubr.msk.bf16.vlgmr.msra.gmra.mrb[0].mxu1 %vm489_vm0, %v4287_v61  ;;  %v4328_v2 = vcombine.low %v6005_v41, %v6010_v51  ;;  %v4289_v3 = vcombine.low %v6010_v51, %v6023_v60  ;;  %v5830_v6 = vmov 0.0   ;;  %v5628_v61 = vld [vmem:[%s6930_s3 + $0x20] sm:$0x1f]   ;;  %p5769_p13 = pneg %p5768_p12 }
  0x35   : > { %v689_v54 = vsel %vm5999_vm3, %v684_v48, %v688_v40  ;;  %4952 = vmatprep.mubr.msk.bf16.mxu1 %vm489_vm0, %v4288_v0  ;;  %v4329_v11 = vcombine.low %v6023_v60, %v428_v42  ;;  %v4346_v41 = vcombine.low %v6018_v57, %v6030_v62  ;;  %v4347_v51 = vcombine.low %v6042_v12, %v6060_v31  ;;  %v5629_v0 = vld [vmem:[%s6930_s3 + $0x30] sm:$0x1f]  }
  0x36   : > { %v4309_v59 = vcombine.low %v675_v47, %v689_v54  ;;  %v952_v1 = vrot.slane %v951_v58, 4  ;;  %v4348_v60 = vcombine.low %v6065_v35, %v675_v47  ;;  %5004 = vmatprep.subr.bf16.mxu1 %v5830_v6  ;;  %v5626_v58 = vld [vmem:[%s6930_s3] sm:$0x1f]   ;;  %p5776_p3 = pnand %p5775_p2, %p5769_p13 }
  0x37   : > { %4977 = vmatpush3.bf16.msra.mxu0 %v5608_v29 }
  0x38   : > { %4978 = vmatprep.subr.bf16.mxu0 %v5610_v49  ;;  %4969 = vmatmul.mubr.msk.bf16.gmra.mrb[4].mxu0 %vm489_vm0, %v4309_v59  ;;  %v957_v57 = vsel %vm5999_vm3, %v952_v1, %v956_v63  ;;  %v5627_v59 = vld [vmem:[%s6930_s3 + $0x18] sm:$0x1f]   ;;  %v5636_v63 = vld [vmem:[%s6931_s4] sm:$0xff]  }
  0x39   : > { %4980 = vmatprep.mubr.msk.bf16.mxu0 %vm489_vm0, %v4326_v55  ;;  %v4349_v62 = vcombine.low %v689_v54, %v957_v57  ;;  %v5630_v1 = vld [vmem:[%s6930_s3 + $0x38] sm:$0x1f]  }
  0x3b   : > { %4979 = vmatpush3.bf16.msra.mxu0 %v5610_v49 }
  0x3c   : > { %4988 = vmatprep.subr.bf16.mxu0 %v5614_v56  ;;  %4953 = vmatmul.mubr.msk.bf16.gmra.mrb[4].mxu1 %vm489_vm0, %v4289_v3  ;;  %v5633_v3 = vld [vmem:[%s6930_s3 + $0x58] sm:$0x1f]  }
  0x3d   : > { %5012 = vmatprep.mubr.msk.bf16.mxu1 %vm5831_vm4, %v5830_v6 }
  0x40   : > { %4981 = vmatmul.mubr.msk.bf16.vlgmr.msra.gmra.mrb[0].mxu0 %vm489_vm0, %v4327_v5  ;;  %v5631_v5 = vld [vmem:[%s6930_s3 + $0x40] sm:$0x1f]  }
  0x41   : > { %4989 = vmatpush3.bf16.msra.mxu0 %v5614_v56  ;;  %4984 = vmatprep.mubr.msk.bf16.mxu0 %vm489_vm0, %v4328_v2  ;;  %v5637_v2 = vld [vmem:[%s6931_s4 + $0x8] sm:$0xff]  }
  0x42   : > { %4990 = vmatprep.subr.bf16.mxu0 %v5616_v8 }
  0x45   : > { %4991 = vmatpush3.bf16.msra.mxu0 %v5616_v8  ;;  %v5632_v8 = vld [vmem:[%s6930_s3 + $0x50] sm:$0x1f]  }
  0x46   : > { %4992 = vmatprep.subr.bf16.mxu0 %v5620_v4 }
  0x48   : > { %4985 = vmatmul.mubr.msk.bf16.gmra.mrb[4].mxu0 %vm489_vm0, %v4329_v11  ;;  %v5635_v11 = vld [vmem:[%s6930_s3 + $0x70] sm:$0x1f]  }
  0x49   : > { %4993 = vmatpush3.bf16.msra.mxu0 %v5620_v4  ;;  %4996 = vmatprep.mubr.msk.bf16.mxu0 %vm489_vm0, %v4346_v41  ;;  %v5634_v4 = vld [vmem:[%s6930_s3 + $0x60] sm:$0x1f]  }
  0x4a   : > { %4994 = vmatprep.subr.bf16.mxu0 %v5623_v22 }
  0x4d   : > { %4995 = vmatpush3.bf16.msra.mxu0 %v5623_v22 }
  0x4e   : > { %5064 = vmatprep.subr.bf16.mxu0 %v5830_v6 }
  0x50   : > { %4997 = vmatmul.mubr.msk.bf16.vlgmr.msra.gmra.mrb[0].mxu0 %vm489_vm0, %v4347_v51 }
  0x51   : > { %5000 = vmatprep.mubr.msk.bf16.mxu0 %vm489_vm0, %v4348_v60 }
  0x58   : > { %5001 = vmatmul.mubr.msk.bf16.gmra.mrb[4].mxu0 %vm489_vm0, %v4349_v62  ;;  %v5638_v62 = vld [vmem:[%s6930_s3 + $0x8] sm:$0x1f]  }
  0x59   : > { %5072 = vmatprep.mubr.msk.bf16.mxu0 %vm5831_vm4, %v5830_v6 }
 0x107   : > { %v4950_v7 = vpop.f32.mrb[0].mxu1 }
 0x108   : > { %v536_v9 = vpop.f32.mrb[1].mxu1  ;;  %v569_v18 = vadd.f32 %v4950_v7, %v4285_v17  ;;  %v5639_v7 = vld [vmem:[%s6931_s4 + $0x10] sm:$0xff]  }
 0x109   : > { %v4951_v10 = vpop.f32.mrb[2].mxu1  ;;  %v567_v19 = vadd.f32 %v4285_v17, %v536_v9  ;;  %v5640_v9 = vld [vmem:[%s6931_s4 + $0x18] sm:$0xff]  }
 0x10a   : > { %v539_v36 = vpop.f32.mrb[3].mxu1  ;;  %v570_v21 = vadd.f32 %v4951_v10, %v4285_v17 }
 0x10b   : > { %v568_v25 = vadd.f32 %v4285_v17, %v539_v36 }
 0x10f   : > { %v4954_v12 = vpop.f32.mrb[4].mxu1 }
 0x110   : > { %v552_v13 = vpop.f32.mrb[5].mxu1  ;;  %v573_v33 = vadd.f32 %v4954_v12, %v4285_v17 }
 0x111   : > { %v4955_v14 = vpop.f32.mrb[6].mxu1  ;;  %v571_v37 = vadd.f32 %v4285_v17, %v552_v13 }
 0x112   : > { %v555_v15 = vpop.f32.mrb[7].mxu1  ;;  %v574_v40 = vadd.f32 %v4955_v14, %v4285_v17 }
 0x113   : > { %v572_v44 = vadd.f32 %v4285_v17, %v555_v15  ;;  %v5641_v15 = vld [vmem:[%s6930_s3 + $0x10] sm:$0x1f]   ;;  %v5642_v17 = vld [vmem:[%s6931_s4 + $0x20] sm:$0xff]  }
 0x123   : > { %v4998_v20 = vpop.f32.mrb[0].mxu0 }
 0x124   : > { %v5433_v23 = vadd.f32 %v4998_v20, %v569_v18  ;;  %v1042_v24 = vpop.f32.mrb[1].mxu0  ;;  %v5643_v18 = vld [vmem:[%s6931_s4 + $0x28] sm:$0xff]  }
 0x125   : > { %v5435_v26 = vadd.f32 %v1042_v24, %v567_v19  ;;  %v4999_v27 = vpop.f32.mrb[2].mxu0 }
 0x126   : > { %v5437_v28 = vadd.f32 %v4999_v27, %v570_v21  ;;  %v1045_v29 = vpop.f32.mrb[3].mxu0  ;;  %v1083_v31 = vmax.f32 %v5433_v23, 0.0 }
 0x127   : > { %v5439_v30 = vadd.f32 %v1045_v29, %v568_v25  ;;  %v1081_v34 = vmax.f32 %v5435_v26, 0.0 }
 0x128   : > { %v1084_v32 = vmax.f32 %v5437_v28, 0.0 }
 0x129   : > { %v1082_v35 = vmax.f32 %v5439_v30, 0.0 }
 0x12a   : > { %v6135_v38 = vpack.c.bf16 %v1084_v32, %v1083_v31 }
 0x12b   : > { %v6137_v39 = vpack.c.bf16 %v1082_v35, %v1081_v34  ;;  %v5002_v16 = vpop.f32.mrb[4].mxu0 }
 0x12c   : > { %v5441_v42 = vadd.f32 %v5002_v16, %v573_v33  ;;  %v1058_v43 = vpop.f32.mrb[5].mxu0  ;;  %v5644_v33 = vld [vmem:[%s6931_s4 + $0x30] sm:$0xff]   ;;  %v5646_v16 = vld [vmem:[%s6931_s4 + $0x40] sm:$0xff]  }
 0x12d   : > { %v5443_v45 = vadd.f32 %v1058_v43, %v571_v37  ;;  %v5003_v46 = vpop.f32.mrb[6].mxu0  ;;  %5005 = vmatpush3.bf16.msra.mxu1 %v6137_v39  ;;  %5065 = vmatpush3.bf16.msra.mxu0 %v6137_v39  ;;  %v5645_v37 = vld [vmem:[%s6931_s4 + $0x38] sm:$0xff]   ;;  %v5649_v43 = vld [vmem:[%s6931_s4 + $0x50] sm:$0xff]  }
 0x12e   : > { %v5445_v47 = vadd.f32 %v5003_v46, %v574_v40  ;;  %v1061_v48 = vpop.f32.mrb[7].mxu0  ;;  %5006 = vmatprep.subr.bf16.mxu1 %v5830_v6  ;;  %5066 = vmatprep.subr.bf16.mxu0 %v5830_v6  ;;  %v1087_v50 = vmax.f32 %v5441_v42, 0.0  ;;  %v5647_v40 = vld [vmem:[%s6931_s4 + $0x48] sm:$0xff]  }
 0x12f   : > { %v5447_v49 = vadd.f32 %v1061_v48, %v572_v44  ;;  %v1085_v53 = vmax.f32 %v5443_v45, 0.0  ;;  %v5648_v42 = vld [vmem:[%s6930_s3 + $0x28] sm:$0x1f]   ;;  %v5650_v44 = vld [vmem:[%s6931_s4 + $0x58] sm:$0xff]  }
 0x130   : > { %v1088_v52 = vmax.f32 %v5445_v47, 0.0 }
 0x131   : > { %v1086_v54 = vmax.f32 %v5447_v49, 0.0  ;;  %5007 = vmatpush3.bf16.msra.mxu1 %v6135_v38  ;;  %5067 = vmatpush3.bf16.msra.mxu0 %v6135_v38 }
 0x132   : > { %v6145_v55 = vpack.c.bf16 %v1088_v52, %v1087_v50  ;;  %5008 = vmatprep.subr.bf16.mxu1 %v5830_v6  ;;  %5068 = vmatprep.subr.bf16.mxu0 %v5830_v6 }
 0x133   : > { %v6149_v56 = vpack.c.bf16 %v1086_v54, %v1085_v53 }
 0x135   : > { %5009 = vmatpush3.bf16.msra.mxu1 %v6149_v56  ;;  %5069 = vmatpush3.bf16.msra.mxu0 %v6149_v56 }
 0x136   : > { %5010 = vmatprep.subr.bf16.mxu1 %v5830_v6  ;;  %5070 = vmatprep.subr.bf16.mxu0 %v5830_v6 }
 0x139   : > { %5011 = vmatpush3.bf16.msra.mxu1 %v6145_v55  ;;  %5071 = vmatpush3.bf16.msra.mxu0 %v6145_v55 }
 0x13a   : > { %5084 = vmatprep.subr.bf16.mxu0 %v5830_v6  ;;  %5016 = vmatprep.subr.bf16.mxu1 %v5830_v6 }
 0x13c   : > { %5013 = vmatmul.mubr.msk.bf16.vlgmr.msra.gmra.mrb[8].mxu1 %vm489_vm0, %v5626_v58  ;;  %5073 = vmatmul.mubr.msk.bf16.vlgmr.msra.gmra.mrb[8].mxu0 %vm489_vm0, %v5627_v59 }
 0x13d   : > { %5085 = vmatpush3.bf16.msra.mxu0 %v6137_v39  ;;  %5092 = vmatprep.mubr.msk.bf16.mxu0 %vm5831_vm4, %v5830_v6 }
 0x13e   : > { %5086 = vmatprep.subr.bf16.mxu0 %v5830_v6  ;;  %5020 = vmatprep.mubr.msk.bf16.mxu1 %vm5831_vm4, %v5830_v6 }
 0x13f   : > { %5017 = vmatpush3.bf16.msra.mxu1 %v5636_v63 }
 0x140   : > { %5018 = vmatprep.subr.bf16.mxu1 %v5830_v6 }
 0x141   : > { %5087 = vmatpush3.bf16.msra.mxu0 %v6135_v38 }
 0x142   : > { %5088 = vmatprep.subr.bf16.mxu0 %v5830_v6 }
 0x143   : > { %5019 = vmatpush3.bf16.msra.mxu1 %v5637_v2 }
 0x144   : > { %5024 = vmatprep.subr.bf16.mxu1 %v5830_v6 }
 0x145   : > { %5089 = vmatpush3.bf16.msra.mxu0 %v6149_v56 }
 0x146   : > { %5090 = vmatprep.subr.bf16.mxu0 %v5830_v6 }
 0x149   : > { %5091 = vmatpush3.bf16.msra.mxu0 %v6145_v55 }
 0x14a   : > { %5124 = vmatprep.subr.bf16.mxu0 %v5830_v6 }
 0x14c   : > { %5093 = vmatmul.mubr.msk.bf16.vlgmr.msra.gmra.mrb[12].mxu0 %vm489_vm0, %v5628_v61 }
 0x14d   : > { %5125 = vmatpush3.bf16.msra.mxu0 %v6137_v39  ;;  %5132 = vmatprep.mubr.msk.bf16.mxu0 %vm5831_vm4, %v5830_v6 }
 0x14e   : > { %5126 = vmatprep.subr.bf16.mxu0 %v5830_v6 }
 0x151   : > { %5127 = vmatpush3.bf16.msra.mxu0 %v6135_v38 }
 0x152   : > { %5128 = vmatprep.subr.bf16.mxu0 %v5830_v6 }
 0x155   : > { %5129 = vmatpush3.bf16.msra.mxu0 %v6149_v56 }
 0x156   : > { %5130 = vmatprep.subr.bf16.mxu0 %v5830_v6 }
 0x159   : > { %5131 = vmatpush3.bf16.msra.mxu0 %v6145_v55 }
 0x15a   : > { %5144 = vmatprep.subr.bf16.mxu0 %v5830_v6 }
 0x15c   : > { %5133 = vmatmul.mubr.msk.bf16.vlgmr.msra.gmra.mrb[16].mxu0 %vm489_vm0, %v5629_v0 }
 0x15d   : > { %5145 = vmatpush3.bf16.msra.mxu0 %v6137_v39  ;;  %5152 = vmatprep.mubr.msk.bf16.mxu0 %vm5831_vm4, %v5830_v6 }
 0x15e   : > { %5146 = vmatprep.subr.bf16.mxu0 %v5830_v6 }
 0x161   : > { %5147 = vmatpush3.bf16.msra.mxu0 %v6135_v38 }
 0x162   : > { %5148 = vmatprep.subr.bf16.mxu0 %v5830_v6 }
 0x165   : > { %5149 = vmatpush3.bf16.msra.mxu0 %v6149_v56 }
 0x166   : > { %5150 = vmatprep.subr.bf16.mxu0 %v5830_v6 }
 0x169   : > { %5151 = vmatpush3.bf16.msra.mxu0 %v6145_v55 }
 0x16a   : > { %5164 = vmatprep.subr.bf16.mxu0 %v5830_v6 }
 0x16c   : > { %5153 = vmatmul.mubr.msk.bf16.vlgmr.msra.gmra.mrb[20].mxu0 %vm489_vm0, %v5630_v1 }
 0x16d   : > { %5165 = vmatpush3.bf16.msra.mxu0 %v6137_v39  ;;  %5172 = vmatprep.mubr.msk.bf16.mxu0 %vm5831_vm4, %v5830_v6 }
 0x16e   : > { %5166 = vmatprep.subr.bf16.mxu0 %v5830_v6 }
 0x171   : > { %5167 = vmatpush3.bf16.msra.mxu0 %v6135_v38 }
 0x172   : > { %5168 = vmatprep.subr.bf16.mxu0 %v5830_v6 }
 0x175   : > { %5169 = vmatpush3.bf16.msra.mxu0 %v6149_v56 }
 0x176   : > { %5170 = vmatprep.subr.bf16.mxu0 %v5830_v6 }
 0x179   : > { %5171 = vmatpush3.bf16.msra.mxu0 %v6145_v55 }
 0x17a   : > { %5204 = vmatprep.subr.bf16.mxu0 %v5830_v6 }
 0x17c   : > { %5173 = vmatmul.mubr.msk.bf16.vlgmr.msra.gmra.mrb[24].mxu0 %vm489_vm0, %v5631_v5 }
 0x17d   : > { %5205 = vmatpush3.bf16.msra.mxu0 %v6137_v39  ;;  %5212 = vmatprep.mubr.msk.bf16.mxu0 %vm5831_vm4, %v5830_v6 }
 0x17e   : > { %5206 = vmatprep.subr.bf16.mxu0 %v5830_v6 }
 0x181   : > { %5207 = vmatpush3.bf16.msra.mxu0 %v6135_v38 }
 0x182   : > { %5208 = vmatprep.subr.bf16.mxu0 %v5830_v6 }
 0x185   : > { %5209 = vmatpush3.bf16.msra.mxu0 %v6149_v56 }
 0x186   : > { %5210 = vmatprep.subr.bf16.mxu0 %v5830_v6 }
 0x189   : > { %5211 = vmatpush3.bf16.msra.mxu0 %v6145_v55 }
 0x18a   : > { %5224 = vmatprep.subr.bf16.mxu0 %v5830_v6 }
 0x18c   : > { %5213 = vmatmul.mubr.msk.bf16.vlgmr.msra.gmra.mrb[28].mxu0 %vm489_vm0, %v5632_v8 }
 0x18d   : > { %5225 = vmatpush3.bf16.msra.mxu0 %v6137_v39  ;;  %5232 = vmatprep.mubr.msk.bf16.mxu0 %vm5831_vm4, %v5830_v6 }
 0x18e   : > { %5226 = vmatprep.subr.bf16.mxu0 %v5830_v6 }
 0x191   : > { %5227 = vmatpush3.bf16.msra.mxu0 %v6135_v38 }
 0x192   : > { %5228 = vmatprep.subr.bf16.mxu0 %v5830_v6 }
 0x195   : > { %5229 = vmatpush3.bf16.msra.mxu0 %v6149_v56 }
 0x196   : > { %5230 = vmatprep.subr.bf16.mxu0 %v5830_v6 }
 0x199   : > { %5231 = vmatpush3.bf16.msra.mxu0 %v6145_v55 }
 0x19a   : > { %5244 = vmatprep.subr.bf16.mxu0 %v5830_v6 }
 0x19c   : > { %5233 = vmatmul.mubr.msk.bf16.vlgmr.msra.gmra.mrb[32].mxu0 %vm489_vm0, %v5633_v3  ;;  %v5651_v3 = vld [vmem:[%s6931_s4 + $0x60] sm:$0xff]  }
 0x19d   : > { %5245 = vmatpush3.bf16.msra.mxu0 %v6137_v39  ;;  %5252 = vmatprep.mubr.msk.bf16.mxu0 %vm5831_vm4, %v5830_v6 }
 0x19e   : > { %5246 = vmatprep.subr.bf16.mxu0 %v5830_v6 }
 0x1a1   : > { %5247 = vmatpush3.bf16.msra.mxu0 %v6135_v38 }
 0x1a2   : > { %5248 = vmatprep.subr.bf16.mxu0 %v5830_v6 }
 0x1a5   : > { %5249 = vmatpush3.bf16.msra.mxu0 %v6149_v56 }
 0x1a6   : > { %5250 = vmatprep.subr.bf16.mxu0 %v5830_v6 }
 0x1a9   : > { %5251 = vmatpush3.bf16.msra.mxu0 %v6145_v55 }
 0x1aa   : > { %5284 = vmatprep.subr.bf16.mxu0 %v5830_v6 }
 0x1ac   : > { %5253 = vmatmul.mubr.msk.bf16.vlgmr.msra.gmra.mrb[36].mxu0 %vm489_vm0, %v5634_v4 }
 0x1ad   : > { %5285 = vmatpush3.bf16.msra.mxu0 %v6137_v39  ;;  %5292 = vmatprep.mubr.msk.bf16.mxu0 %vm5831_vm4, %v5830_v6 }
 0x1ae   : > { %5286 = vmatprep.subr.bf16.mxu0 %v5830_v6 }
 0x1b1   : > { %5287 = vmatpush3.bf16.msra.mxu0 %v6135_v38 }
 0x1b2   : > { %5288 = vmatprep.subr.bf16.mxu0 %v5830_v6 }
 0x1b5   : > { %5289 = vmatpush3.bf16.msra.mxu0 %v6149_v56 }
 0x1b6   : > { %5290 = vmatprep.subr.bf16.mxu0 %v5830_v6 }
 0x1b9   : > { %5291 = vmatpush3.bf16.msra.mxu0 %v6145_v55 }
 0x1ba   : > { %5304 = vmatprep.subr.bf16.mxu0 %v5830_v6 }
 0x1bc   : > { %5293 = vmatmul.mubr.msk.bf16.vlgmr.msra.gmra.mrb[40].mxu0 %vm489_vm0, %v5635_v11 }
 0x1bd   : > { %5305 = vmatpush3.bf16.msra.mxu0 %v6137_v39  ;;  %5312 = vmatprep.mubr.msk.bf16.mxu0 %vm5831_vm4, %v5830_v6 }
 0x1be   : > { %5306 = vmatprep.subr.bf16.mxu0 %v5830_v6 }
 0x1c1   : > { %5307 = vmatpush3.bf16.msra.mxu0 %v6135_v38 }
 0x1c2   : > { %5308 = vmatprep.subr.bf16.mxu0 %v5830_v6 }
 0x1c5   : > { %5309 = vmatpush3.bf16.msra.mxu0 %v6149_v56 }
 0x1c6   : > { %5310 = vmatprep.subr.bf16.mxu0 %v5830_v6 }
 0x1c9   : > { %5311 = vmatpush3.bf16.msra.mxu0 %v6145_v55 }
 0x1ca   : > { %5324 = vmatprep.subr.bf16.mxu0 %v5830_v6 }
 0x20f   : > { %v1144_v22 = vpop.f32.mrb[8].mxu1  ;;  %v1492_v19 = vpop.f32.mrb[8].mxu0 }
 0x210   : > { %v5014_v41 = vpop.f32.mrb[9].mxu1  ;;  %v5074_v20 = vpop.f32.mrb[9].mxu0 }
 0x211   : > { %v1147_v51 = vpop.f32.mrb[10].mxu1  ;;  %v1495_v21 = vpop.f32.mrb[10].mxu0  ;;  %v5653_v41 = vld [vmem:[%s6931_s4 + $0x70] sm:$0xff]  }
 0x212   : > { %v1151_v60 = vpack.c.bf16 %v1147_v51, %v1144_v22  ;;  %v5015_v57 = vpop.f32.mrb[11].mxu1  ;;  %v1499_v23 = vpack.c.bf16 %v1495_v21, %v1492_v19  ;;  %v5075_v24 = vpop.f32.mrb[11].mxu0  ;;  %v5652_v22 = vld [vmem:[%s6931_s4 + $0x68] sm:$0xff]   ;;  %v5654_v51 = vld [vmem:[%s6931_s4 + $0x78] sm:$0xff]  }
 0x213   : > { %v5656_v57 = vld [vmem:[%s6931_s4 + $0x88] sm:$0xff]  }
 0x214   : > { %5021 = vmatmul.mubr.msk.bf16.vlgmr.msra.gmra.mrb[12].mxu1 %vm1168_vm5, %v1151_v60  ;;  %v5655_v60 = vld [vmem:[%s6931_s4 + $0x80] sm:$0xff]  }
 0x215   : > { %5025 = vmatpush3.bf16.msra.mxu1 %v6137_v39  ;;  %5032 = vmatprep.mubr.msk.bf16.mxu1 %vm5831_vm4, %v5830_v6 }
 0x216   : > { %5026 = vmatprep.subr.bf16.mxu1 %v5830_v6 }
 0x219   : > { %5027 = vmatpush3.bf16.msra.mxu1 %v6135_v38 }
 0x21a   : > { %5028 = vmatprep.subr.bf16.mxu1 %v5830_v6 }
 0x21d   : > { %5029 = vmatpush3.bf16.msra.mxu1 %v6149_v56 }
 0x21e   : > { %5030 = vmatprep.subr.bf16.mxu1 %v5830_v6 }
 0x21f   : > { %v1608_v25 = vpop.f32.mrb[12].mxu0 }
 0x220   : > { %v5094_v26 = vpop.f32.mrb[13].mxu0 }
 0x221   : > { %5031 = vmatpush3.bf16.msra.mxu1 %v6145_v55  ;;  %v1611_v27 = vpop.f32.mrb[14].mxu0 }
 0x222   : > { %5036 = vmatprep.subr.bf16.mxu1 %v5830_v6  ;;  %v1615_v28 = vpack.c.bf16 %v1611_v27, %v1608_v25  ;;  %v5095_v29 = vpop.f32.mrb[15].mxu0  ;;  %v5667_v27 = vld [vmem:[%s6930_s3 + $0x78] sm:$0x1f]  }
 0x223   : > { %5313 = vmatmul.mubr.msk.bf16.vlgmr.msra.gmra.mrb[44].mxu0 %vm489_vm0, %v5667_v27  ;;  %v5686_v27 = vld [vmem:[%s6933_s6 + $0x60] sm:$0xff]  }
 0x224   : > { %5033 = vmatmul.mubr.msk.bf16.vlgmr.msra.gmra.mrb[16].mxu1 %vm489_vm0, %v5638_v62  ;;  %v5657_v62 = vld [vmem:[%s6930_s3 + $0x48] sm:$0x1f]   ;;  %5332 = vmatprep.mubr.msk.bf16.mxu0 %vm5831_vm4, %v5830_v6 }
 0x225   : > { %5037 = vmatpush3.bf16.msra.mxu1 %v5639_v7  ;;  %5040 = vmatprep.mubr.msk.bf16.mxu1 %vm5831_vm4, %v5830_v6  ;;  %v5658_v7 = vld [vmem:[%s6931_s4 + $0x90] sm:$0xff]  }
 0x226   : > { %5038 = vmatprep.subr.bf16.mxu1 %v5830_v6 }
 0x229   : > { %5039 = vmatpush3.bf16.msra.mxu1 %v5640_v9  ;;  %v5659_v9 = vld [vmem:[%s6931_s4 + $0x98] sm:$0xff]  }
 0x22a   : > { %5044 = vmatprep.subr.bf16.mxu1 %v5830_v6 }
 0x22f   : > { %v1840_v45 = vpop.f32.mrb[16].mxu0 }
 0x230   : > { %v5134_v46 = vpop.f32.mrb[17].mxu0 }
 0x231   : > { %v1843_v47 = vpop.f32.mrb[18].mxu0 }
 0x232   : > { %v1847_v48 = vpack.c.bf16 %v1843_v47, %v1840_v45  ;;  %v5135_v49 = vpop.f32.mrb[19].mxu0 }
 0x23f   : > { %v1956_v50 = vpop.f32.mrb[20].mxu0 }
 0x240   : > { %v5154_v52 = vpop.f32.mrb[21].mxu0 }
 0x241   : > { %v1959_v53 = vpop.f32.mrb[22].mxu0  ;;  %v5674_v52 = vld [vmem:[%s6933_s6] sm:$0xff]  }
 0x242   : > { %v1963_v54 = vpack.c.bf16 %v1959_v53, %v1956_v50  ;;  %v5155_v58 = vpop.f32.mrb[23].mxu0  ;;  %5325 = vmatpush3.bf16.msra.mxu0 %v5674_v52  ;;  %v5675_v53 = vld [vmem:[%s6933_s6 + $0x8] sm:$0xff]   ;;  %v5706_v52 = vld [vmem:[%s6933_s6 + $0x100] sm:$0xff]  }
 0x243   : > { %5326 = vmatprep.subr.bf16.mxu0 %v5830_v6 }
 0x246   : > { %5327 = vmatpush3.bf16.msra.mxu0 %v5675_v53 }
 0x247   : > { %5328 = vmatprep.subr.bf16.mxu0 %v5830_v6 }
 0x24f   : > { %v2072_v59 = vpop.f32.mrb[24].mxu0 }
 0x250   : > { %v5174_v61 = vpop.f32.mrb[25].mxu0 }
 0x251   : > { %v2075_v63 = vpop.f32.mrb[26].mxu0  ;;  %v5670_v61 = vld [vmem:[%s6931_s4 + $0xe0] sm:$0xff]  }
 0x252   : > { %v2079_v0 = vpack.c.bf16 %v2075_v63, %v2072_v59  ;;  %v5175_v1 = vpop.f32.mrb[27].mxu0 }
 0x253   : > { %v5671_v1 = vld [vmem:[%s6931_s4 + $0xe8] sm:$0xff]  }
 0x2f7   : > { %v1260_v10 = vpop.f32.mrb[16].mxu1 }
 0x2f8   : > { %v5034_v36 = vpop.f32.mrb[17].mxu1 }
 0x2f9   : > { %v1263_v12 = vpop.f32.mrb[18].mxu1 }
 0x2fa   : > { %v1267_v13 = vpack.c.bf16 %v1263_v12, %v1260_v10  ;;  %v5035_v14 = vpop.f32.mrb[19].mxu1  ;;  %v2304_v10 = vpop.f32.mrb[28].mxu0 }
 0x2fb   : > { %v5214_v36 = vpop.f32.mrb[29].mxu0 }
 0x2fc   : > { %5041 = vmatmul.mubr.msk.bf16.vlgmr.msra.gmra.mrb[12].mxu1 %vm1168_vm5, %v1267_v13  ;;  %v2307_v12 = vpop.f32.mrb[30].mxu0  ;;  %v5710_v36 = vld [vmem:[%s6935_s8] ss:$16 sps:$4 sm:$0xff]  }
 0x2fd   : > { %5045 = vmatpush3.bf16.msra.mxu1 %v6137_v39  ;;  %5052 = vmatprep.mubr.msk.bf16.mxu1 %vm5831_vm4, %v5830_v6  ;;  %v2311_v13 = vpack.c.bf16 %v2307_v12, %v2304_v10  ;;  %v5215_v14 = vpop.f32.mrb[31].mxu0  ;;  %v5679_v12 = vld [vmem:[%s6933_s6 + $0x28] sm:$0xff]  }
 0x2fe   : > { %5046 = vmatprep.subr.bf16.mxu1 %v5830_v6  ;;  %v5715_v14 = vld [vmem:[%s6935_s8 + $0x24] ss:$16 sps:$4 sm:$0xff]  }
 0x301   : > { %5047 = vmatpush3.bf16.msra.mxu1 %v6135_v38 }
 0x302   : > { %5048 = vmatprep.subr.bf16.mxu1 %v5830_v6 }
 0x305   : > { %5049 = vmatpush3.bf16.msra.mxu1 %v6149_v56 }
 0x306   : > { %5050 = vmatprep.subr.bf16.mxu1 %v5830_v6 }
 0x309   : > { %5051 = vmatpush3.bf16.msra.mxu1 %v6145_v55 }
 0x30a   : > { %5056 = vmatprep.subr.bf16.mxu1 %v5830_v6 }
 0x30c   : > { %5053 = vmatmul.mubr.msk.bf16.vlgmr.msra.gmra.mrb[20].mxu1 %vm489_vm0, %v5641_v15  ;;  %v2420_v15 = vpop.f32.mrb[32].mxu0 }
 0x30d   : > { %5057 = vmatpush3.bf16.msra.mxu1 %v5642_v17  ;;  %5060 = vmatprep.mubr.msk.bf16.mxu1 %vm5831_vm4, %v5830_v6  ;;  %v5234_v17 = vpop.f32.mrb[33].mxu0 }
 0x30e   : > { %5058 = vmatprep.subr.bf16.mxu1 %v5830_v6  ;;  %v5680_v17 = vld [vmem:[%s6933_s6 + $0x30] sm:$0xff]  }
 0x311   : > { %5059 = vmatpush3.bf16.msra.mxu1 %v5643_v18  ;;  %v2423_v18 = vpop.f32.mrb[34].mxu0 }
 0x312   : > { %5076 = vmatprep.subr.bf16.mxu1 %v5830_v6  ;;  %v2427_v19 = vpack.c.bf16 %v2423_v18, %v2420_v15  ;;  %v5235_v20 = vpop.f32.mrb[35].mxu0  ;;  %v5713_v15 = vld [vmem:[%s6935_s8 + $0x20] ss:$16 sps:$4 sm:$0xff]   ;;  %v5718_v18 = vld [vmem:[%s6935_s8 + $0x44] ss:$16 sps:$4 sm:$0xff]  }
 0x313   : > { %v2536_v21 = vpop.f32.mrb[36].mxu0  ;;  %v5681_v20 = vld [vmem:[%s6933_s6 + $0x38] sm:$0xff]  }
 0x3df   : > { %v1376_v30 = vpop.f32.mrb[20].mxu1 }
 0x3e0   : > { %v5054_v31 = vpop.f32.mrb[21].mxu1 }
 0x3e1   : > { %v1379_v32 = vpop.f32.mrb[22].mxu1  ;;  %v5660_v31 = vld [vmem:[%s6931_s4 + $0xa0] sm:$0xff]  }
 0x3e2   : > { %v1383_v34 = vpack.c.bf16 %v1379_v32, %v1376_v30  ;;  %v5055_v35 = vpop.f32.mrb[23].mxu1 }
 0x3e3   : > { %v5662_v35 = vld [vmem:[%s6931_s4 + $0xb0] sm:$0xff]  }
 0x3e4   : > { %5061 = vmatmul.mubr.msk.bf16.vlgmr.msra.gmra.mrb[12].mxu1 %vm1168_vm5, %v1383_v34  ;;  %v5661_v34 = vld [vmem:[%s6931_s4 + $0xa8] sm:$0xff]  }
 0x3e5   : > { %5077 = vmatpush3.bf16.msra.mxu1 %v5644_v33  ;;  %5080 = vmatprep.mubr.msk.bf16.mxu1 %vm5831_vm4, %v5830_v6 }
 0x3e6   : > { %5078 = vmatprep.subr.bf16.mxu1 %v5830_v6 }
 0x3e9   : > { %5079 = vmatpush3.bf16.msra.mxu1 %v5645_v37  ;;  %v5663_v37 = vld [vmem:[%s6931_s4 + $0xb8] sm:$0xff]  }
 0x3ea   : > { %5096 = vmatprep.subr.bf16.mxu1 %v5830_v6 }
 0x3f0   : > { %5081 = vmatmul.mubr.msk.bf16.vlgmr.msra.gmra.mrb[12].mxu1 %vm1168_vm5, %v1499_v23  ;;  %v5254_v23 = vpop.f32.mrb[37].mxu0 }
 0x3f1   : > { %5097 = vmatpush3.bf16.msra.mxu1 %v5646_v16  ;;  %5100 = vmatprep.mubr.msk.bf16.mxu1 %vm5831_vm4, %v5830_v6  ;;  %v2539_v24 = vpop.f32.mrb[38].mxu0  ;;  %v5664_v16 = vld [vmem:[%s6931_s4 + $0xc0] sm:$0xff]  }
 0x3f2   : > { %5098 = vmatprep.subr.bf16.mxu1 %v5830_v6  ;;  %v2543_v25 = vpack.c.bf16 %v2539_v24, %v2536_v21  ;;  %v5255_v26 = vpop.f32.mrb[39].mxu0  ;;  %v5682_v21 = vld [vmem:[%s6933_s6 + $0x40] sm:$0xff]   ;;  %v5683_v24 = vld [vmem:[%s6933_s6 + $0x48] sm:$0xff]  }
 0x3f3   : > { %v5685_v26 = vld [vmem:[%s6933_s6 + $0x58] sm:$0xff]  }
 0x3f5   : > { %5099 = vmatpush3.bf16.msra.mxu1 %v5647_v40  ;;  %v5665_v40 = vld [vmem:[%s6931_s4 + $0xc8] sm:$0xff]  }
 0x3f6   : > { %5104 = vmatprep.subr.bf16.mxu1 %v5830_v6 }
 0x3fc   : > { %5101 = vmatmul.mubr.msk.bf16.vlgmr.msra.gmra.mrb[12].mxu1 %vm1168_vm5, %v1615_v28 }
 0x3fd   : > { %5105 = vmatpush3.bf16.msra.mxu1 %v6137_v39  ;;  %5112 = vmatprep.mubr.msk.bf16.mxu1 %vm5831_vm4, %v5830_v6 }
 0x3fe   : > { %5106 = vmatprep.subr.bf16.mxu1 %v5830_v6 }
 0x401   : > { %5107 = vmatpush3.bf16.msra.mxu1 %v6135_v38 }
 0x402   : > { %5108 = vmatprep.subr.bf16.mxu1 %v5830_v6 }
 0x405   : > { %5109 = vmatpush3.bf16.msra.mxu1 %v6149_v56 }
 0x406   : > { %5110 = vmatprep.subr.bf16.mxu1 %v5830_v6 }
 0x409   : > { %5111 = vmatpush3.bf16.msra.mxu1 %v6145_v55 }
 0x40a   : > { %5116 = vmatprep.subr.bf16.mxu1 %v5830_v6 }
 0x40c   : > { %5113 = vmatmul.mubr.msk.bf16.vlgmr.msra.gmra.mrb[24].mxu1 %vm489_vm0, %v5648_v42  ;;  %v5666_v42 = vld [vmem:[%s6930_s3 + $0x68] sm:$0x1f]  }
 0x40d   : > { %5117 = vmatpush3.bf16.msra.mxu1 %v5649_v43  ;;  %5120 = vmatprep.mubr.msk.bf16.mxu1 %vm5831_vm4, %v5830_v6 }
 0x40e   : > { %5118 = vmatprep.subr.bf16.mxu1 %v5830_v6 }
 0x411   : > { %5119 = vmatpush3.bf16.msra.mxu1 %v5650_v44 }
 0x412   : > { %5136 = vmatprep.subr.bf16.mxu1 %v5830_v6 }
 0x4df   : > { %v1724_v5 = vpop.f32.mrb[24].mxu1 }
 0x4e0   : > { %v5114_v8 = vpop.f32.mrb[25].mxu1 }
 0x4e1   : > { %v1727_v2 = vpop.f32.mrb[26].mxu1  ;;  %v5673_v8 = vld [vmem:[%s6931_s4 + $0xf8] sm:$0xff]  }
 0x4e2   : > { %v1731_v4 = vpack.c.bf16 %v1727_v2, %v1724_v5  ;;  %v5115_v11 = vpop.f32.mrb[27].mxu1  ;;  %v5672_v5 = vld [vmem:[%s6931_s4 + $0xf0] sm:$0xff]  }
 0x4e3   : > { %v5676_v2 = vld [vmem:[%s6933_s6 + $0x10] sm:$0xff]  }
 0x4e4   : > { %5121 = vmatmul.mubr.msk.bf16.vlgmr.msra.gmra.mrb[12].mxu1 %vm1168_vm5, %v1731_v4  ;;  %5329 = vmatpush3.bf16.msra.mxu0 %v5676_v2  ;;  %v4358_v4 = vld [vmem:[%s6932_s5] ss:$0 sm:$0xff] }
 0x4e5   : > { %5137 = vmatpush3.bf16.msra.mxu1 %v5651_v3  ;;  %5140 = vmatprep.mubr.msk.bf16.mxu1 %vm5831_vm4, %v5830_v6  ;;  %v5677_v3 = vld [vmem:[%s6933_s6 + $0x18] sm:$0xff]  }
 0x4e6   : > { %5138 = vmatprep.subr.bf16.mxu1 %v5830_v6  ;;  %5330 = vmatprep.subr.bf16.mxu0 %v5830_v6 }
 0x4e8   : > { %5331 = vmatpush3.bf16.msra.mxu0 %v5677_v3 }
 0x4e9   : > { %5139 = vmatpush3.bf16.msra.mxu1 %v5652_v22  ;;  %5336 = vmatprep.subr.bf16.mxu0 %v5830_v6 }
 0x4ea   : > { %5156 = vmatprep.subr.bf16.mxu1 %v5830_v6 }
 0x4f0   : > { %5141 = vmatmul.mubr.msk.bf16.vlgmr.msra.gmra.mrb[12].mxu1 %vm1168_vm5, %v1847_v48 }
 0x4f1   : > { %5157 = vmatpush3.bf16.msra.mxu1 %v5653_v41  ;;  %5160 = vmatprep.mubr.msk.bf16.mxu1 %vm5831_vm4, %v5830_v6 }
 0x4f2   : > { %5158 = vmatprep.subr.bf16.mxu1 %v5830_v6 }
 0x4f5   : > { %5159 = vmatpush3.bf16.msra.mxu1 %v5654_v51 }
 0x4f6   : > { %5176 = vmatprep.subr.bf16.mxu1 %v5830_v6 }
 0x4fc   : > { %5161 = vmatmul.mubr.msk.bf16.vlgmr.msra.gmra.mrb[12].mxu1 %vm1168_vm5, %v1963_v54 }
 0x4fd   : > { %5177 = vmatpush3.bf16.msra.mxu1 %v5655_v60  ;;  %5180 = vmatprep.mubr.msk.bf16.mxu1 %vm5831_vm4, %v5830_v6 }
 0x4fe   : > { %5178 = vmatprep.subr.bf16.mxu1 %v5830_v6 }
 0x501   : > { %5179 = vmatpush3.bf16.msra.mxu1 %v5656_v57 }
 0x502   : > { %5184 = vmatprep.subr.bf16.mxu1 %v5830_v6 }
 0x508   : > { %5181 = vmatmul.mubr.msk.bf16.vlgmr.msra.gmra.mrb[12].mxu1 %vm1168_vm5, %v2079_v0 }
 0x509   : > { %5185 = vmatpush3.bf16.msra.mxu1 %v6137_v39  ;;  %5192 = vmatprep.mubr.msk.bf16.mxu1 %vm5831_vm4, %v5830_v6 }
 0x50a   : > { %5186 = vmatprep.subr.bf16.mxu1 %v5830_v6 }
 0x50d   : > { %5187 = vmatpush3.bf16.msra.mxu1 %v6135_v38 }
 0x50e   : > { %5188 = vmatprep.subr.bf16.mxu1 %v5830_v6 }
 0x511   : > { %5189 = vmatpush3.bf16.msra.mxu1 %v6149_v56 }
 0x512   : > { %5190 = vmatprep.subr.bf16.mxu1 %v5830_v6 }
 0x515   : > { %5191 = vmatpush3.bf16.msra.mxu1 %v6145_v55 }
 0x516   : > { %5196 = vmatprep.subr.bf16.mxu1 %v5830_v6 }
 0x518   : > { %5193 = vmatmul.mubr.msk.bf16.vlgmr.msra.gmra.mrb[28].mxu1 %vm489_vm0, %v5657_v62 }
 0x519   : > { %5197 = vmatpush3.bf16.msra.mxu1 %v5658_v7  ;;  %5200 = vmatprep.mubr.msk.bf16.mxu1 %vm5831_vm4, %v5830_v6 }
 0x51a   : > { %5198 = vmatprep.subr.bf16.mxu1 %v5830_v6 }
 0x51d   : > { %5199 = vmatpush3.bf16.msra.mxu1 %v5659_v9  ;;  %v5678_v9 = vld [vmem:[%s6933_s6 + $0x20] sm:$0xff]  }
 0x51e   : > { %5216 = vmatprep.subr.bf16.mxu1 %v5830_v6 }
 0x5eb   : > { %v2188_v28 = vpop.f32.mrb[28].mxu1 }
 0x5ec   : > { %v5194_v29 = vpop.f32.mrb[29].mxu1 }
 0x5ed   : > { %v2191_v30 = vpop.f32.mrb[30].mxu1  ;;  %v5687_v29 = vld [vmem:[%s6933_s6 + $0x68] sm:$0xff]  }
 0x5ee   : > { %v2195_v32 = vpack.c.bf16 %v2191_v30, %v2188_v28  ;;  %v5195_v33 = vpop.f32.mrb[31].mxu1  ;;  %v5688_v30 = vld [vmem:[%s6933_s6 + $0x70] sm:$0xff]  }
 0x5f0   : > { %5201 = vmatmul.mubr.msk.bf16.vlgmr.msra.gmra.mrb[12].mxu1 %vm1168_vm5, %v2195_v32  ;;  %v5690_v32 = vld [vmem:[%s6933_s6 + $0x80] sm:$0xff]  }
 0x5f1   : > { %5217 = vmatpush3.bf16.msra.mxu1 %v5660_v31  ;;  %5220 = vmatprep.mubr.msk.bf16.mxu1 %vm5831_vm4, %v5830_v6  ;;  %v5689_v31 = vld [vmem:[%s6933_s6 + $0x78] sm:$0xff]  }
 0x5f2   : > { %5218 = vmatprep.subr.bf16.mxu1 %v5830_v6 }
 0x5f5   : > { %5219 = vmatpush3.bf16.msra.mxu1 %v5661_v34  ;;  %v5691_v34 = vld [vmem:[%s6933_s6 + $0x88] sm:$0xff]  }
 0x5f6   : > { %5236 = vmatprep.subr.bf16.mxu1 %v5830_v6 }
 0x5fc   : > { %5221 = vmatmul.mubr.msk.bf16.vlgmr.msra.gmra.mrb[12].mxu1 %vm1168_vm5, %v2311_v13  ;;  %v5712_v13 = vld [vmem:[%s6935_s8 + $0x4] ss:$16 sps:$4 sm:$0xff]  }
 0x5fd   : > { %5237 = vmatpush3.bf16.msra.mxu1 %v5662_v35  ;;  %5240 = vmatprep.mubr.msk.bf16.mxu1 %vm5831_vm4, %v5830_v6  ;;  %v5692_v35 = vld [vmem:[%s6933_s6 + $0x90] sm:$0xff]  }
 0x5fe   : > { %5238 = vmatprep.subr.bf16.mxu1 %v5830_v6 }
 0x601   : > { %5239 = vmatpush3.bf16.msra.mxu1 %v5663_v37  ;;  %v5693_v37 = vld [vmem:[%s6933_s6 + $0x98] sm:$0xff]  }
 0x602   : > { %5256 = vmatprep.subr.bf16.mxu1 %v5830_v6 }
 0x608   : > { %5241 = vmatmul.mubr.msk.bf16.vlgmr.msra.gmra.mrb[12].mxu1 %vm1168_vm5, %v2427_v19  ;;  %v5716_v19 = vld [vmem:[%s6935_s8 + $0x40] ss:$16 sps:$4 sm:$0xff]  }
 0x609   : > { %5257 = vmatpush3.bf16.msra.mxu1 %v5664_v16  ;;  %5260 = vmatprep.mubr.msk.bf16.mxu1 %vm5831_vm4, %v5830_v6  ;;  %v5694_v16 = vld [vmem:[%s6933_s6 + $0xa0] sm:$0xff]  }
 0x60a   : > { %5258 = vmatprep.subr.bf16.mxu1 %v5830_v6 }
 0x60d   : > { %5259 = vmatpush3.bf16.msra.mxu1 %v5665_v40 }
 0x60e   : > { %5264 = vmatprep.subr.bf16.mxu1 %v5830_v6 }
 0x614   : > { %5261 = vmatmul.mubr.msk.bf16.vlgmr.msra.gmra.mrb[12].mxu1 %vm1168_vm5, %v2543_v25  ;;  %v5684_v25 = vld [vmem:[%s6933_s6 + $0x50] sm:$0xff]  }
 0x615   : > { %5265 = vmatpush3.bf16.msra.mxu1 %v6137_v39  ;;  %5272 = vmatprep.mubr.msk.bf16.mxu1 %vm5831_vm4, %v5830_v6  ;;  %v5668_v39 = vld [vmem:[%s6931_s4 + $0xd0] sm:$0xff]  }
 0x616   : > { %5266 = vmatprep.subr.bf16.mxu1 %v5830_v6 }
 0x619   : > { %5267 = vmatpush3.bf16.msra.mxu1 %v6135_v38  ;;  %v5669_v38 = vld [vmem:[%s6931_s4 + $0xd8] sm:$0xff]  }
 0x61a   : > { %5268 = vmatprep.subr.bf16.mxu1 %v5830_v6 }
 0x61d   : > { %5269 = vmatpush3.bf16.msra.mxu1 %v6149_v56 }
 0x61e   : > { %5270 = vmatprep.subr.bf16.mxu1 %v5830_v6 }
 0x621   : > { %5271 = vmatpush3.bf16.msra.mxu1 %v6145_v55  ;;  %v2768_v55 = vpop.f32.mrb[40].mxu0 }
 0x622   : > { %5276 = vmatprep.subr.bf16.mxu1 %v5830_v6  ;;  %v5294_v56 = vpop.f32.mrb[41].mxu0 }
 0x623   : > { %v2771_v43 = vpop.f32.mrb[42].mxu0 }
 0x624   : > { %5273 = vmatmul.mubr.msk.bf16.vlgmr.msra.gmra.mrb[32].mxu1 %vm489_vm0, %v5666_v42  ;;  %v2775_v44 = vpack.c.bf16 %v2771_v43, %v2768_v55  ;;  %v5295_v45 = vpop.f32.mrb[43].mxu0  ;;  %v5695_v42 = vld [vmem:[%s6933_s6 + $0xa8] sm:$0xff]   ;;  %v5698_v55 = vld [vmem:[%s6933_s6 + $0xc0] sm:$0xff]  }
 0x625   : > { %5277 = vmatpush3.bf16.msra.mxu1 %v5668_v39  ;;  %5280 = vmatprep.mubr.msk.bf16.mxu1 %vm5831_vm4, %v5830_v6  ;;  %v2884_v46 = vpop.f32.mrb[44].mxu0  ;;  %v5696_v39 = vld [vmem:[%s6933_s6 + $0xb0] sm:$0xff]   ;;  %v5699_v43 = vld [vmem:[%s6933_s6 + $0xc8] sm:$0xff]   ;;  %v5701_v45 = vld [vmem:[%s6933_s6 + $0xd8] sm:$0xff]  }
 0x626   : > { %5278 = vmatprep.subr.bf16.mxu1 %v5830_v6  ;;  %v5314_v47 = vpop.f32.mrb[45].mxu0 }
 0x627   : > { %v2887_v48 = vpop.f32.mrb[46].mxu0 }
 0x628   : > { %v2891_v49 = vpack.c.bf16 %v2887_v48, %v2884_v46  ;;  %v5315_v50 = vpop.f32.mrb[47].mxu0  ;;  %v5702_v46 = vld [vmem:[%s6933_s6 + $0xe0] sm:$0xff]   ;;  %v5703_v48 = vld [vmem:[%s6933_s6 + $0xe8] sm:$0xff]  }
 0x629   : > { %5279 = vmatpush3.bf16.msra.mxu1 %v5669_v38  ;;  %v5697_v38 = vld [vmem:[%s6933_s6 + $0xb8] sm:$0xff]  }
 0x62a   : > { %5296 = vmatprep.subr.bf16.mxu1 %v5830_v6  ;;  %v5705_v50 = vld [vmem:[%s6933_s6 + $0xf8] sm:$0xff]  }
 0x6f7   : > { %v2652_v54 = vpop.f32.mrb[32].mxu1 }
 0x6f8   : > { %v5274_v58 = vpop.f32.mrb[33].mxu1 }
 0x6f9   : > { %v2655_v59 = vpop.f32.mrb[34].mxu1  ;;  %v5708_v58 = vld [vmem:[%s6933_s6 + $0x110] sm:$0xff]  }
 0x6fa   : > { %v2659_v63 = vpack.c.bf16 %v2655_v59, %v2652_v54  ;;  %v5275_v0 = vpop.f32.mrb[35].mxu1  ;;  %v5707_v54 = vld [vmem:[%s6933_s6 + $0x108] sm:$0xff]   ;;  %v5709_v59 = vld [vmem:[%s6933_s6 + $0x118] sm:$0xff]  }
 0x6fb   : > { %v5719_v0 = vld [vmem:[%s6935_s8 + $0x60] ss:$16 sps:$4 sm:$0xff]  }
 0x6fc   : > { %5281 = vmatmul.mubr.msk.bf16.vlgmr.msra.gmra.mrb[12].mxu1 %vm1168_vm5, %v2659_v63  ;;  %v5721_v63 = vld [vmem:[%s6935_s8 + $0x64] ss:$16 sps:$4 sm:$0xff]  }
 0x6fd   : > { %5297 = vmatpush3.bf16.msra.mxu1 %v5670_v61  ;;  %5300 = vmatprep.mubr.msk.bf16.mxu1 %vm5831_vm4, %v5830_v6 }
 0x6fe   : > { %5298 = vmatprep.subr.bf16.mxu1 %v5830_v6 }
 0x701   : > { %5299 = vmatpush3.bf16.msra.mxu1 %v5671_v1  ;;  %v5724_v1 = vld [vmem:[%s6935_s8 + $0xc] ss:$16 sps:$4 sm:$0xff]  }
 0x702   : > { %5316 = vmatprep.subr.bf16.mxu1 %v5830_v6 }
 0x708   : > { %5301 = vmatmul.mubr.msk.bf16.vlgmr.msra.gmra.mrb[12].mxu1 %vm1168_vm5, %v2775_v44  ;;  %v5700_v44 = vld [vmem:[%s6933_s6 + $0xd0] sm:$0xff]  }
 0x709   : > { %5317 = vmatpush3.bf16.msra.mxu1 %v5672_v5  ;;  %5320 = vmatprep.mubr.msk.bf16.mxu1 %vm5831_vm4, %v5830_v6  ;;  %v2958_v5 = vld [vmem:[%s6934_s7] sm:$0x1] }
 0x70a   : > { %5318 = vmatprep.subr.bf16.mxu1 %v5830_v6 }
 0x70d   : > { %5319 = vmatpush3.bf16.msra.mxu1 %v5673_v8 }
 0x70e   : > { %3784 = vmatprep.subr.bf16.mxu1 %v5712_v13  ;;  %v5736_v13 = vld [vmem:[%s6937_s10 + $0x48] sm:$0xff]  }
 0x714   : > { %5321 = vmatmul.mubr.msk.bf16.vlgmr.msra.gmra.mrb[12].mxu1 %vm1168_vm5, %v2891_v49  ;;  %v5704_v49 = vld [vmem:[%s6933_s6 + $0xf0] sm:$0xff]  }
 0x715   : > { %3785 = vmatpush1.bf16.msra.mxu1 %v5710_v36  ;;  %v5734_v36 = vld [vmem:[%s6937_s10 + $0x40] sm:$0xff]  }
 0x716   : > { %3786 = vmatprep.subr.bf16.mxu1 %v5715_v14  ;;  %v5737_v14 = vld [vmem:[%s6937_s10 + $0x8] sm:$0xff]  }
 0x719   : > { %3787 = vmatpush1.bf16.msra.mxu1 %v5713_v15  ;;  %v5738_v15 = vld [vmem:[%s6937_s10 + $0x50] sm:$0xff]  }
 0x71a   : > { %3788 = vmatprep.subr.bf16.mxu1 %v5718_v18  ;;  %v5740_v18 = vld [vmem:[%s6937_s10 + $0x58] sm:$0xff]  }
 0x71d   : > { %3789 = vmatpush1.bf16.msra.mxu1 %v5716_v19  ;;  %v5741_v19 = vld [vmem:[%s6937_s10 + $0x18] sm:$0xff]  }
 0x71e   : > { %3790 = vmatprep.subr.bf16.mxu1 %v5721_v63 }
 0x721   : > { %3791 = vmatpush1.bf16.msra.mxu1 %v5719_v0  ;;  %v5757_v0 = vld [vmem:[%s6937_s10 + $0x98] sm:$0xff]  }
 0x722   : > { %3825 = vmatprep.subr.bf16.mxu1 %v5724_v1 }
 0x7e7   : > { %v2946_v11 = vpop.f32.mrb[12].mxu1 }
 0x7e8   : > { %v5448_v22 = vadd.f32 %v4358_v4, %v2946_v11  ;;  %v5322_v41 = vpop.f32.mrb[13].mxu1 }
 0x7e9   : > { %v2949_v51 = vpop.f32.mrb[14].mxu1  ;;  %v5722_v41 = vld [vmem:[%s6935_s8 + $0x8] ss:$16 sps:$4 sm:$0xff]  }
 0x7ea   : > { %v5449_v60 = vadd.f32 %v4358_v4, %v2949_v51  ;;  %v5323_v57 = vpop.f32.mrb[15].mxu1  ;;  %v2955_v62 = vmax.f32 %v5448_v22, 0.0 }
 0x7eb   : > { %v5725_v57 = vld [vmem:[%s6935_s8 + $0x28] ss:$16 sps:$4 sm:$0xff]  }
 0x7ec   : > { %v2956_v7 = vmax.f32 %v5449_v60, 0.0  ;;  %v5727_v60 = vld [vmem:[%s6935_s8 + $0x2c] ss:$16 sps:$4 sm:$0xff]  }
 0x7ee   : > { %v6562_v10 = vpack.c.bf16 %v2956_v7, %v2955_v62  ;;  %v5730_v62 = vld [vmem:[%s6935_s8 + $0x4c] ss:$16 sps:$4 sm:$0xff]   ;;  %v5728_v7 = vld [vmem:[%s6935_s8 + $0x48] ss:$16 sps:$4 sm:$0xff]  }
 0x7f0   : > { %5333 = vmatmul.mubr.msk.bf16.vlgmr.msra.gmra.mrb[48].mxu0 %vm489_vm0, %v6562_v10  ;;  %v6602_v23 = vshrl.u32 %v6562_v10, 16  ;;  %v3124_v28 = vrot.slane %v6562_v10, 1  ;;  %v3280_v40 = vrot.slane %v6562_v10, 2  ;;  %v3436_v47 = vrot.slane %v6562_v10, 3 }
 0x7f1   : > { %5337 = vmatpush3.bf16.msra.mxu0 %v5678_v9  ;;  %5344 = vmatprep.mubr.msk.bf16.mxu0 %vm5831_vm4, %v5830_v6  ;;  %v3592_v61 = vrot.slane %v6562_v10, 4  ;;  %v5733_v9 = vld [vmem:[%s6935_s8 + $0x6c] ss:$16 sps:$4 sm:$0xff]   ;;  %v5731_v10 = vld [vmem:[%s6935_s8 + $0x68] ss:$16 sps:$4 sm:$0xff]  }
 0x7f2   : > { %5338 = vmatprep.subr.bf16.mxu0 %v5830_v6  ;;  %v3202_v33 = vrot.slane %v6602_v23, 1  ;;  %v3358_v56 = vrot.slane %v6602_v23, 2  ;;  %v3514_v53 = vrot.slane %v6602_v23, 3 }
 0x7f5   : > { %5339 = vmatpush3.bf16.msra.mxu0 %v5679_v12  ;;  %v5735_v12 = vld [vmem:[%s6937_s10] sm:$0xff]  }
 0x7f6   : > { %5340 = vmatprep.subr.bf16.mxu0 %v5830_v6 }
 0x7f9   : > { %5341 = vmatpush3.bf16.msra.mxu0 %v5680_v17  ;;  %v5739_v17 = vld [vmem:[%s6937_s10 + $0x10] sm:$0xff]  }
 0x7fa   : > { %5342 = vmatprep.subr.bf16.mxu0 %v5830_v6 }
 0x7fd   : > { %5343 = vmatpush3.bf16.msra.mxu0 %v5681_v20  ;;  %v5742_v20 = vld [vmem:[%s6937_s10 + $0x60] sm:$0xff]  }
 0x7fe   : > { %5348 = vmatprep.subr.bf16.mxu0 %v5830_v6 }
 0x800   : > { %5345 = vmatmul.mubr.msk.bf16.vlgmr.msra.gmra.mrb[48].mxu0 %vm489_vm0, %v6602_v23  ;;  %v5744_v23 = vld [vmem:[%s6937_s10 + $0x68] sm:$0xff]  }
 0x801   : > { %5349 = vmatpush3.bf16.msra.mxu0 %v5682_v21  ;;  %5356 = vmatprep.mubr.msk.bf16.mxu0 %vm5831_vm4, %v5830_v6  ;;  %v5743_v21 = vld [vmem:[%s6937_s10 + $0x20] sm:$0xff]  }
 0x802   : > { %5350 = vmatprep.subr.bf16.mxu0 %v5830_v6 }
 0x805   : > { %5351 = vmatpush3.bf16.msra.mxu0 %v5683_v24  ;;  %v5745_v24 = vld [vmem:[%s6937_s10 + $0x28] sm:$0xff]  }
 0x806   : > { %5352 = vmatprep.subr.bf16.mxu0 %v5830_v6 }
 0x809   : > { %5353 = vmatpush3.bf16.msra.mxu0 %v5684_v25  ;;  %v5746_v25 = vld [vmem:[%s6937_s10 + $0x70] sm:$0xff]  }
 0x80a   : > { %5354 = vmatprep.subr.bf16.mxu0 %v5830_v6 }
 0x80d   : > { %5355 = vmatpush3.bf16.msra.mxu0 %v5685_v26  ;;  %v5747_v26 = vld [vmem:[%s6937_s10 + $0x30] sm:$0xff]  }
 0x80e   : > { %5360 = vmatprep.subr.bf16.mxu0 %v5830_v6 }
 0x810   : > { %5357 = vmatmul.mubr.msk.bf16.vlgmr.msra.gmra.mrb[48].mxu0 %vm489_vm0, %v3124_v28  ;;  %v5749_v28 = vld [vmem:[%s6937_s10 + $0x38] sm:$0xff]  }
 0x811   : > { %5361 = vmatpush3.bf16.msra.mxu0 %v5686_v27  ;;  %5368 = vmatprep.mubr.msk.bf16.mxu0 %vm5831_vm4, %v5830_v6  ;;  %v5748_v27 = vld [vmem:[%s6937_s10 + $0x78] sm:$0xff]  }
 0x812   : > { %5362 = vmatprep.subr.bf16.mxu0 %v5830_v6 }
 0x815   : > { %5363 = vmatpush3.bf16.msra.mxu0 %v5687_v29  ;;  %v5750_v29 = vld [vmem:[%s6937_s10 + $0xc0] sm:$0xff]  }
 0x816   : > { %5364 = vmatprep.subr.bf16.mxu0 %v5830_v6 }
 0x819   : > { %5365 = vmatpush3.bf16.msra.mxu0 %v5688_v30  ;;  %v3761_v30 = vlaneseq }
 0x81a   : > { %5366 = vmatprep.subr.bf16.mxu0 %v5830_v6 }
 0x81d   : > { %5367 = vmatpush3.bf16.msra.mxu0 %v5689_v31  ;;  %v3762_v31 = vshrl.u32 %v3761_v30, 7 }
 0x81e   : > { %5372 = vmatprep.subr.bf16.mxu0 %v5830_v6 }
 0x820   : > { %5369 = vmatmul.mubr.msk.bf16.vlgmr.msra.gmra.mrb[48].mxu0 %vm489_vm0, %v3202_v33  ;;  %v3679_v33 = vld [vmem:[%s6936_s9] sm:$0xf] }
 0x821   : > { %5373 = vmatpush3.bf16.msra.mxu0 %v5690_v32  ;;  %5380 = vmatprep.mubr.msk.bf16.mxu0 %vm5831_vm4, %v5830_v6  ;;  %v3763_v32 = vsub.s32 0, %v3762_v31 }
 0x822   : > { %5374 = vmatprep.subr.bf16.mxu0 %v5830_v6 }
 0x825   : > { %5375 = vmatpush3.bf16.msra.mxu0 %v5691_v34  ;;  %v3767_v34 = vsub.s32 1, %v3762_v31 }
 0x826   : > { %5376 = vmatprep.subr.bf16.mxu0 %v5830_v6 }
 0x829   : > { %5377 = vmatpush3.bf16.msra.mxu0 %v5692_v35  ;;  %v3764_v35 = vrot.slane %v3679_v33, %v3763_v32 }
 0x82a   : > { %5378 = vmatprep.subr.bf16.mxu0 %v5830_v6 }
 0x82d   : > { %5379 = vmatpush3.bf16.msra.mxu0 %v5693_v37  ;;  %v3768_v37 = vrot.slane %v3679_v33, %v3767_v34 }
 0x82e   : > { %5384 = vmatprep.subr.bf16.mxu0 %v5830_v6 }
 0x830   : > { %5381 = vmatmul.mubr.msk.bf16.vlgmr.msra.gmra.mrb[48].mxu0 %vm489_vm0, %v3280_v40 }
 0x831   : > { %5385 = vmatpush3.bf16.msra.mxu0 %v5694_v16  ;;  %5392 = vmatprep.mubr.msk.bf16.mxu0 %vm5831_vm4, %v5830_v6 }
 0x832   : > { %5386 = vmatprep.subr.bf16.mxu0 %v5830_v6 }
 0x835   : > { %5387 = vmatpush3.bf16.msra.mxu0 %v5695_v42 }
 0x836   : > { %5388 = vmatprep.subr.bf16.mxu0 %v5830_v6 }
 0x839   : > { %5389 = vmatpush3.bf16.msra.mxu0 %v5696_v39 }
 0x83a   : > { %5390 = vmatprep.subr.bf16.mxu0 %v5830_v6 }
 0x83d   : > { %5391 = vmatpush3.bf16.msra.mxu0 %v5697_v38 }
 0x83e   : > { %5396 = vmatprep.subr.bf16.mxu0 %v5830_v6 }
 0x840   : > { %5393 = vmatmul.mubr.msk.bf16.vlgmr.msra.gmra.mrb[48].mxu0 %vm489_vm0, %v3358_v56 }
 0x841   : > { %5397 = vmatpush3.bf16.msra.mxu0 %v5698_v55  ;;  %5404 = vmatprep.mubr.msk.bf16.mxu0 %vm5831_vm4, %v5830_v6 }
 0x842   : > { %5398 = vmatprep.subr.bf16.mxu0 %v5830_v6 }
 0x845   : > { %5399 = vmatpush3.bf16.msra.mxu0 %v5699_v43 }
 0x846   : > { %5400 = vmatprep.subr.bf16.mxu0 %v5830_v6 }
 0x849   : > { %5401 = vmatpush3.bf16.msra.mxu0 %v5700_v44 }
 0x84a   : > { %5402 = vmatprep.subr.bf16.mxu0 %v5830_v6 }
 0x84d   : > { %5403 = vmatpush3.bf16.msra.mxu0 %v5701_v45  ;;  %v5751_v45 = vld [vmem:[%s6937_s10 + $0x80] sm:$0xff]  }
 0x84e   : > { %5408 = vmatprep.subr.bf16.mxu0 %v5830_v6 }
 0x850   : > { %5405 = vmatmul.mubr.msk.bf16.vlgmr.msra.gmra.mrb[48].mxu0 %vm489_vm0, %v3436_v47  ;;  %v5752_v47 = vld [vmem:[%s6937_s10 + $0xc8] sm:$0xff]  }
 0x851   : > { %5409 = vmatpush3.bf16.msra.mxu0 %v5702_v46  ;;  %5416 = vmatprep.mubr.msk.bf16.mxu0 %vm5831_vm4, %v5830_v6 }
 0x852   : > { %5410 = vmatprep.subr.bf16.mxu0 %v5830_v6 }
 0x855   : > { %5411 = vmatpush3.bf16.msra.mxu0 %v5703_v48  ;;  %v5753_v48 = vld [vmem:[%s6937_s10 + $0x88] sm:$0xff]  }
 0x856   : > { %5412 = vmatprep.subr.bf16.mxu0 %v5830_v6 }
 0x859   : > { %5413 = vmatpush3.bf16.msra.mxu0 %v5704_v49  ;;  %v3775_v49 = vsub.s32 3, %v3762_v31 }
 0x85a   : > { %5414 = vmatprep.subr.bf16.mxu0 %v5830_v6 }
 0x85d   : > { %5415 = vmatpush3.bf16.msra.mxu0 %v5705_v50  ;;  %v5754_v50 = vld [vmem:[%s6937_s10 + $0xd0] sm:$0xff]  }
 0x85e   : > { %5420 = vmatprep.subr.bf16.mxu0 %v5830_v6 }
 0x860   : > { %5417 = vmatmul.mubr.msk.bf16.vlgmr.msra.gmra.mrb[48].mxu0 %vm489_vm0, %v3514_v53  ;;  %v5755_v53 = vld [vmem:[%s6937_s10 + $0x90] sm:$0xff]  }
 0x861   : > { %5421 = vmatpush3.bf16.msra.mxu0 %v5706_v52  ;;  %5428 = vmatprep.mubr.msk.bf16.mxu0 %vm5831_vm4, %v5830_v6  ;;  %v3776_v52 = vrot.slane %v3679_v33, %v3775_v49 }
 0x862   : > { %5422 = vmatprep.subr.bf16.mxu0 %v5830_v6 }
 0x865   : > { %5423 = vmatpush3.bf16.msra.mxu0 %v5707_v54  ;;  %v5756_v54 = vld [vmem:[%s6937_s10 + $0xd8] sm:$0xff]  }
 0x866   : > { %5424 = vmatprep.subr.bf16.mxu0 %v5830_v6 }
 0x869   : > { %5425 = vmatpush3.bf16.msra.mxu0 %v5708_v58 }
 0x86a   : > { %5426 = vmatprep.subr.bf16.mxu0 %v5830_v6  ;;  %v5832_v6 = vmov 0  }
 0x86b   : > { %3816 = vmatprep.mubr.bf16.mxu1 %v5832_v6 }
 0x86d   : > { %5427 = vmatpush3.bf16.msra.mxu0 %v5709_v59 }
 0x870   : > { %5429 = vmatmul.mubr.msk.bf16.vlgmr.msra.gmra.mrb[48].mxu0 %vm489_vm0, %v3592_v61 }
 0x943   : > { %v3654_v8 = vpop.f32.mrb[48].mxu0 }
 0x944   : > { %v5450_v2 = vadd.f32 %v3654_v8, %v2958_v5  ;;  %v5430_v3 = vpop.f32.mrb[49].mxu0 }
 0x945   : > { %v3657_v4 = vpop.f32.mrb[50].mxu0  ;;  %v3771_v3 = vsub.s32 2, %v3762_v31 }
 0x946   : > { %v3661_v11 = vmax.f32 %v5450_v2, 0.0  ;;  %v5431_v22 = vpop.f32.mrb[51].mxu0  ;;  %v5759_v2 = vld [vmem:[%s6937_s10 + $0xa0] sm:$0xff]   ;;  %v5760_v4 = vld [vmem:[%s6937_s10 + $0xe8] sm:$0xff]  }
 0x947   : > { %v3772_v22 = vrot.slane %v3679_v33, %v3771_v3 }
 0x948   : > { %v3662_v51 = vpack.c.bf16 %v3661_v11, %v3661_v11  ;;  %v5761_v11 = vld [vmem:[%s6937_s10 + $0xa8] sm:$0xff]  }
 0x94a   : > { %4654 = vmatmul.mubr.msk.bf16.vlgmr.msra.gmra.mrb[36].mxu1 %vm489_vm0, %v3662_v51 }
 0x94b   : > { %3826 = vmatpush1.bf16.msra.mxu1 %v5722_v41  ;;  %3857 = vmatprep.mubr.bf16.mxu1 %v5832_v6  ;;  %v5758_v6 = vld [vmem:[%s6937_s10 + $0xe0] sm:$0xff]   ;;  %v5762_v41 = vld [vmem:[%s6937_s10 + $0xf0] sm:$0xff]  }
 0x94c   : > { %3827 = vmatprep.subr.bf16.mxu1 %v5727_v60 }
 0x94f   : > { %3828 = vmatpush1.bf16.msra.mxu1 %v5725_v57  ;;  %v5764_v57 = vld [vmem:[%s6937_s10 + $0xf8] sm:$0xff]  }
 0x950   : > { %3829 = vmatprep.subr.bf16.mxu1 %v5730_v62  ;;  %v5765_v62 = vld [vmem:[%s6937_s10 + $0xb8] sm:$0xff]  }
 0x953   : > { %3830 = vmatpush1.bf16.msra.mxu1 %v5728_v7 }
 0x954   : > { %3831 = vmatprep.subr.bf16.mxu1 %v5733_v9 }
 0x957   : > { %3832 = vmatpush1.bf16.msra.mxu1 %v5731_v10 }
 0x958   : > { %4896 = vmatprep.subr.bf16.mxu1 %v5734_v36 }
 0x95a   : > { %4655 = vmatmul.mubr.msk.bf16.vlgmr.msra.gmra.mrb[40].mxu1 %vm489_vm0, %v3662_v51  ;;  %v5763_v51 = vld [vmem:[%s6937_s10 + $0xb0] sm:$0xff]  }
 0x95b   : > { %4897 = vmatpush3.bf16.msra.mxu1 %v5735_v12 }
 0x95c   : > { %4898 = vmatprep.subr.bf16.mxu1 %v5736_v13 }
 0x95f   : > { %4899 = vmatpush3.bf16.msra.mxu1 %v5737_v14 }
 0x960   : > { %4900 = vmatprep.subr.bf16.mxu1 %v5738_v15  ;;  %v3938_v15 = vld [vmem:[%s6938_s11] sm:$0x1] }
 0x963   : > { %4901 = vmatpush3.bf16.msra.mxu1 %v5739_v17 }
 0x964   : > { %4902 = vmatprep.subr.bf16.mxu1 %v5740_v18 }
 0x967   : > { %4903 = vmatpush3.bf16.msra.mxu1 %v5741_v19 }
 0x968   : > { %4904 = vmatprep.subr.bf16.mxu1 %v5742_v20 }
 0x96b   : > { %4905 = vmatpush3.bf16.msra.mxu1 %v5743_v21 }
 0x96c   : > { %4906 = vmatprep.subr.bf16.mxu1 %v5744_v23 }
 0x96f   : > { %4907 = vmatpush3.bf16.msra.mxu1 %v5745_v24 }
 0x970   : > { %4908 = vmatprep.subr.bf16.mxu1 %v5746_v25 }
 0x973   : > { %4909 = vmatpush3.bf16.msra.mxu1 %v5747_v26 }
 0x974   : > { %4910 = vmatprep.subr.bf16.mxu1 %v5748_v27 }
 0x977   : > { %4911 = vmatpush3.bf16.msra.mxu1 %v5749_v28 }
 0x978   : > { %4918 = vmatprep.subr.bf16.mxu1 %v5750_v29 }
 0xa1d   : > { %v3818_v16 = vpop.f32.mrb[36].mxu1 }
 0xa1e   : > { %v3819_v40 = vadd.f32 %v3818_v16, %v3764_v35  ;;  %v3820_v42 = vpop.f32.mrb[37].mxu1 }
 0xa1f   : > { %v3821_v39 = vadd.f32 %v3820_v42, %v3768_v37  ;;  %v3822_v38 = vpop.f32.mrb[38].mxu1 }
 0xa20   : > { %v3866_v55 = vmax.f32 %v3819_v40, 0.0  ;;  %v3823_v56 = vpop.f32.mrb[39].mxu1 }
 0xa21   : > { %v3867_v43 = vmax.f32 %v3821_v39, 0.0 }
 0xa22   : > { %v3870_v46 = vpack.c.bf16 %v3866_v55, %v3866_v55 }
 0xa23   : > { %v3871_v44 = vpack.c.bf16 %v3867_v43, %v3867_v43 }
 0xa25   : > { %4163 = vmatprep.mubr.bf16.mxu1 %v3871_v44 }
 0xa26   : > { %4164 = vmatmul.mubr.bf16.vlgmr.msra.gmra.mrb[44].mxu1 %v3870_v46 }
 0xa27   : > { %4919 = vmatpush3.bf16.msra.mxu1 %v5751_v45 }
 0xa28   : > { %4920 = vmatprep.subr.bf16.mxu1 %v5752_v47 }
 0xa2b   : > { %4921 = vmatpush3.bf16.msra.mxu1 %v5753_v48 }
 0xa2c   : > { %4922 = vmatprep.subr.bf16.mxu1 %v5754_v50 }
 0xa2d   : > { %v3859_v58 = vpop.f32.mrb[40].mxu1 }
 0xa2e   : > { %v3861_v59 = vpop.f32.mrb[41].mxu1  ;;  %v3860_v60 = vadd.f32 %v3859_v58, %v3772_v22 }
 0xa2f   : > { %v3862_v61 = vadd.f32 %v3861_v59, %v3776_v52  ;;  %v3863_v63 = vpop.f32.mrb[42].mxu1  ;;  %4923 = vmatpush3.bf16.msra.mxu1 %v5755_v53 }
 0xa30   : > { %v3864_v1 = vpop.f32.mrb[43].mxu1  ;;  %4924 = vmatprep.subr.bf16.mxu1 %v5756_v54  ;;  %v3868_v7 = vmax.f32 %v3860_v60, 0.0 }
 0xa31   : > { %v3869_v5 = vmax.f32 %v3862_v61, 0.0 }
 0xa32   : > { %v3872_v9 = vpack.c.bf16 %v3868_v7, %v3868_v7 }
 0xa33   : > { %v3873_v8 = vpack.c.bf16 %v3869_v5, %v3869_v5  ;;  %4925 = vmatpush3.bf16.msra.mxu1 %v5757_v0 }
 0xa34   : > { %4926 = vmatprep.subr.bf16.mxu1 %v5758_v6 }
 0xa35   : > { %4203 = vmatprep.mubr.bf16.mxu1 %v3873_v8 }
 0xa37   : > { %4927 = vmatpush3.bf16.msra.mxu1 %v5759_v2 }
 0xa38   : > { %4928 = vmatprep.subr.bf16.mxu1 %v5760_v4 }
 0xa3b   : > { %4929 = vmatpush3.bf16.msra.mxu1 %v5761_v11 }
 0xa3c   : > { %4930 = vmatprep.subr.bf16.mxu1 %v5762_v41 }
 0xa3f   : > { %4931 = vmatpush3.bf16.msra.mxu1 %v5763_v51 }
 0xa40   : > { %4932 = vmatprep.subr.bf16.mxu1 %v5764_v57 }
 0xa43   : > { %4933 = vmatpush3.bf16.msra.mxu1 %v5765_v62 }
 0xa46   : > { %4204 = vmatmul.mubr.bf16.vlgmr.msra.gmra.mrb[48].mxu1 %v3872_v9 }
 0xaf9   : > { %v4912_v10 = vpop.f32.mrb[44].mxu1 }
 0xafa   : > { %v4913_v36 = vpop.f32.mrb[45].mxu1 }
 0xafb   : > { %v4914_v12 = vadd.f32 %v4913_v36, %v4912_v10  ;;  %v4915_v13 = vpop.f32.mrb[46].mxu1 }
 0xafc   : > { %v4916_v14 = vpop.f32.mrb[47].mxu1 }
 0xafd   : > { %v4166_v19 = vadd.f32 %v4914_v12, %v3938_v15 }
 0xb19   : > { %v4934_v17 = vpop.f32.mrb[48].mxu1 }
 0xb1a   : > { %v4935_v18 = vpop.f32.mrb[49].mxu1 }
 0xb1b   : > { %v4936_v20 = vadd.f32 %v4935_v18, %v4934_v17  ;;  %v4937_v21 = vpop.f32.mrb[50].mxu1 }
 0xb1c   : > { %v4938_v23 = vpop.f32.mrb[51].mxu1 }
 0xb1d   : > { %v4206_v24 = vadd.f32 %v4936_v20, %v4166_v19 }
 0xb1f   : > { %4211 = vst [vmem:[%s405_s18] sm:$0x1] %v4206_v24 }
 0xb20   : > { %5779 = shalt.err (!%p5776_p3)
}
 0xb21   : > { %s5780_s15 = scalar_lea.hbm %s6885_s28, 16  ;;  %s5784_s20 = scalar_lea.hbm %s6939_s12, 32 }
 0xb22   : > { %p5781_p4 = scmp.ne.s32.totalorder %s6885_s28, %s5780_s15  ;;  %p5785_p9 = scmp.lt.u32.totalorder %s6885_s28, %s6939_s12 }
 0xb23   : > { %p5786_p10 = scmp.lt.u32.totalorder %s5784_s20, %s5780_s15  ;;  %p5788_p12 = scmp.lt.u32.totalorder %s5780_s15, %s6885_s28 }
 0xb24   : > { %p5782_p7 = pnand %p5781_p4, %p5937_p5 }
 0xb25   : > { %p5787_p11 = por %p5786_p10, %p5785_p9 }
 0xb26   : > { %p5783_p8 = pneg %p5782_p7 }
 0xb27   : > { %p5789_p13 = por %p5788_p12, %p5787_p11 }
 0xb29   : > { %p5790_p0 = pnand %p5789_p13, %p5783_p8 }
 0xb2b   : > { %5793 = shalt.err (!%p5790_p0)
}
 0xb2c   : > { %5560 = dma.vmem_to_hbm [thread:$0]  (%p5937_p5), %s6887_s19, 16, %s6885_s28, %s4213_s29  }
 0xb2d PF: > { %p5566_p1 = scmp.ge.s32.totalorder %s5828_s24, 2  ;;  %s4237_s0 = sand.u32 1, %s5816_s21  }
 0xb2e   : > { %s4238_s25 = scalar_lea.sflag [#allocation3], %s4237_s0 }
 0xb2f   : > { %p5563_p2 = pnand %p5566_p1, %p5941_p6 }
 0xb31   : > { %5811 = dma.done.wait (!%p5563_p2), %s4238_s25, 16  }
 0xb32   : > { %5813 = vsyncadd (!%p5563_p2), %s4238_s25, 4294967280  ;;  %s6947_s17 = sld [smem:[#allocation5_spill]]  ;;  %p22_p3 = scmp.ge.s32.totalorder %s5924_s27, 4  }
 0xb33   : > { %s6948_s21 = smov %s5820_s22  ;;  %s6949_s22 = smov %s5824_s23 }
 0xb34   : > { %s6951_s24 = smov %s5924_s27  ;;  %24 = sbr.rel (!%p22_p3) target bundleno = 5 (0x5), region = 144 }
 0xb38   : > { %s6950_s23 = smov %s6947_s17 }
 0xb3b   :  { %4242 = vsyncpa [#allocation3], 1 }
 0xb3c   :  { %4244 = vsyncpa [#allocation3 + $0x1], 1 }

</bundles_post_ra>
